<compile_context>
chip_gen: v6e
topology: v6e:2x2x1
jax: 0.10.0
libtpu: 0.0.40
codegen_flags: <defaults>
</compile_context>

<pallas_src>
import functools

import jax
import jax.numpy as jnp
from jax.experimental import pallas as pl
from jax.experimental.pallas import tpu as pltpu


# ----------------------------------------------------------------------------
# In-kernel matmul helpers.
#   _mm      : f32 MXU matmul, f32 accumulate (precision-critical chain)
#   _mm_t    : a.T @ b with the transpose folded into the contraction dims
#   _mm_bf16 : bf16 MXU operands, f32 accumulate (GCN branch only)
# ----------------------------------------------------------------------------
def _mm(a, b):
    return jax.lax.dot_general(
        a, b, (((1,), (0,)), ((), ())), preferred_element_type=jnp.float32)


def _mm_t(a, b):
    return jax.lax.dot_general(
        a, b, (((0,), (0,)), ((), ())), preferred_element_type=jnp.float32)


def _mm_bf16(a, b):
    return jax.lax.dot_general(
        a.astype(jnp.bfloat16), b.astype(jnp.bfloat16),
        (((1,), (0,)), ((), ())), preferred_element_type=jnp.float32)


# ----------------------------------------------------------------------------
# Stage 1: GCN branch + MLP branch + gram, fully fused in one kernel.
# Outputs: embs_ori (N,O)  emb_f (N,O)  gram (O,O)
# ----------------------------------------------------------------------------
def _fwd1_kernel(graph_ref, feat0_ref, feat1_ref,
                 w1_ref, b1_ref, w2_ref, b2_ref,
                 mw_ref, mb_ref,
                 ori_ref, embf_ref, gram_ref):
    graph = graph_ref[...]

    # TODO(synk): GCN class definition was not provided in the spec;
    # implemented as a standard 2-layer GCN:
    #   out = A @ relu(A @ X @ W1 + b1) @ W2 + b2.
    h1 = jnp.maximum(
        _mm_bf16(graph, _mm_bf16(feat0_ref[...], w1_ref[...])) + b1_ref[...],
        0.0)                                                     # f32 epilogue
    ori_ref[...] = (_mm_bf16(graph, _mm_bf16(h1, w2_ref[...]))
                    + b2_ref[...]).astype(ori_ref.dtype)

    # MLP([ft, out]) is a single Linear (its hidden loop is empty -> no
    # relu / dropout).  Kept in f32: it feeds the cancellation in stage 2.
    emb_f = _mm(feat1_ref[...], mw_ref[...]) + mb_ref[...]
    embf_ref[...] = emb_f
    # gram = emb_f^T @ emb_f; transpose done by the MXU, not the wrapper.
    gram_ref[...] = _mm_t(emb_f, emb_f)


# ----------------------------------------------------------------------------
# Stage 2: homogeneous embedding, fully fused in one kernel (all f32).
#   res0 = inv @ gram
#   res  = coe2*emb_f - coe2^2 * emb_f @ res0        (scales fused in-kernel)
#   embs_hom = emb_f @ (emb_f^T @ res) - alpha/2 * distance @ res
# ----------------------------------------------------------------------------
def _fwd2_kernel(embf_ref, gram_ref, inv_ref, dist_ref, out_ref, *, alpha, coe2):
    emb_f = embf_ref[...]
    res0 = _mm(inv_ref[...], gram_ref[...])                      # inv @ gram
    res = coe2 * emb_f - (coe2 * coe2) * _mm(emb_f, res0)        # cancellation
    tmp = _mm_t(emb_f, res)                                      # emb_f^T @ res
    out_ref[...] = (_mm(emb_f, tmp)
                    - (alpha * 0.5) * _mm(dist_ref[...], res)).astype(out_ref.dtype)


def _full(shape):
    """Whole-array block (toy N; real N would need M/N/K tiling)."""
    return pl.BlockSpec(shape, lambda *_: (0,) * len(shape))


# ----------------------------------------------------------------------------
# Parameters (deterministic init, module __init__ shapes)
# ----------------------------------------------------------------------------
def init_params(key, ft_size, hid_units, out_ft):
    ks = jax.random.split(key, 6)
    s = 0.1
    return {
        "gcn_w1": s * jax.random.normal(ks[0], (ft_size, hid_units), jnp.float32),
        "gcn_b1": jnp.zeros((1, hid_units), jnp.float32),
        "gcn_w2": s * jax.random.normal(ks[1], (hid_units, out_ft), jnp.float32),
        "gcn_b2": jnp.zeros((1, out_ft), jnp.float32),
        "mlp_w": s * jax.random.normal(ks[2], (ft_size, out_ft), jnp.float32),
        "mlp_b": s * jax.random.normal(ks[3], (1, out_ft), jnp.float32),
    }


# ----------------------------------------------------------------------------
# Forward pass of `modeler` (two pallas_calls + one small host-side inverse)
# ----------------------------------------------------------------------------
def modeler_forward(params, graph, features, distance, *, alpha, beta):
    feat0, feat1 = features
    graph = graph.astype(jnp.float32)
    feat0 = feat0.astype(jnp.float32)
    feat1 = feat1.astype(jnp.float32)
    distance = distance.astype(jnp.float32)

    n = graph.shape[0]
    ft = feat0.shape[1]
    hid = params["gcn_w1"].shape[1]
    out_ft = params["mlp_w"].shape[1]
    coe2 = 1.0 / beta

    # ---- stage 1: one fused pallas_call -----------------------------------
    embs_ori, emb_f, gram = pl.pallas_call(
        _fwd1_kernel,
        grid=(1,),
        in_specs=[
            _full((n, n)), _full((n, ft)), _full((n, ft)),
            _full((ft, hid)), _full((1, hid)),
            _full((hid, out_ft)), _full((1, out_ft)),
            _full((ft, out_ft)), _full((1, out_ft)),
        ],
        out_specs=[_full((n, out_ft)), _full((n, out_ft)),
                   _full((out_ft, out_ft))],
        out_shape=[
            jax.ShapeDtypeStruct((n, out_ft), jnp.float32),
            jax.ShapeDtypeStruct((n, out_ft), jnp.float32),
            jax.ShapeDtypeStruct((out_ft, out_ft), jnp.float32),
        ],
        compiler_params=pltpu.CompilerParams(
            dimension_semantics=("arbitrary",)),
    )(graph, feat0, feat1,
      params["gcn_w1"], params["gcn_b1"], params["gcn_w2"], params["gcn_b2"],
      params["mlp_w"], params["mlp_b"])

    # TODO(synk): tiny (out_ft x out_ft) SPD inverse kept as jnp.linalg.inv
    # glue between the two pallas_calls; an in-kernel Cholesky/Newton-Schulz
    # solve would allow a single fully fused call but needs validation first.
    inv = jnp.linalg.inv(jnp.eye(out_ft, dtype=jnp.float32) + coe2 * gram)

    # ---- stage 2: one fused pallas_call -----------------------------------
    k2 = functools.partial(_fwd2_kernel, alpha=float(alpha), coe2=float(coe2))
    embs_hom = pl.pallas_call(
        k2,
        grid=(1,),
        in_specs=[_full((n, out_ft)), _full((out_ft, out_ft)),
                  _full((out_ft, out_ft)), _full((n, n))],
        out_specs=_full((n, out_ft)),
        out_shape=jax.ShapeDtypeStruct((n, out_ft), jnp.float32),
        compiler_params=pltpu.CompilerParams(
            dimension_semantics=("arbitrary",)),
    )(emb_f, gram, inv, distance)

    return embs_ori, embs_hom


# ----------------------------------------------------------------------------
# Pure-JAX f32 reference (for correctness check)
# ----------------------------------------------------------------------------
def _reference_forward(params, graph, features, distance, *, alpha, beta):
    feat0, feat1 = features
    h1 = jnp.maximum(graph @ (feat0 @ params["gcn_w1"]) + params["gcn_b1"], 0.0)
    embs_ori = graph @ (h1 @ params["gcn_w2"]) + params["gcn_b2"]
    emb_f = feat1 @ params["mlp_w"] + params["mlp_b"]
    coe2 = 1.0 / beta
    res = emb_f.T @ emb_f
    inv = jnp.linalg.inv(jnp.eye(emb_f.shape[1], dtype=jnp.float32) + coe2 * res)
    res = inv @ res
    res = coe2 * emb_f - coe2 * coe2 * (emb_f @ res)
    tmp = emb_f.T @ res
    embs_hom = emb_f @ tmp - alpha / 2.0 * (distance @ res)
    return embs_ori, embs_hom


# ----------------------------------------------------------------------------
if __name__ == "__main__":
    # small, forward-consistent sizes
    N = 64
    ft_size = 32
    hid_units = 32
    out_ft = 16
    alpha = 0.5
    beta = 1.0

    key = jax.random.PRNGKey(0)
    k_p, k_g, k_f0, k_f1, k_d = jax.random.split(key, 5)

    params = init_params(k_p, ft_size, hid_units, out_ft)

    # symmetric normalized adjacency with self-loops
    a = jax.random.uniform(k_g, (N, N), jnp.float32)
    adj = (a + a.T) / 2.0 + jnp.eye(N, dtype=jnp.float32)
    deg = jnp.sum(adj, axis=1, keepdims=True)
    graph = adj / deg

    features = (
        jax.random.normal(k_f0, (N, ft_size), jnp.float32),
        jax.random.normal(k_f1, (N, ft_size), jnp.float32),
    )
    distance = jax.random.uniform(k_d, (N, N), jnp.float32)

    fwd = jax.jit(functools.partial(modeler_forward, alpha=alpha, beta=beta))
    embs_ori, embs_hom = fwd(params, graph, features, distance)
    jax.block_until_ready((embs_ori, embs_hom))

    assert embs_ori.shape == (N, out_ft)
    assert embs_hom.shape == (N, out_ft)
    assert jnp.all(jnp.isfinite(embs_ori)) and jnp.all(jnp.isfinite(embs_hom))

    ref_ori, ref_hom = _reference_forward(
        params, graph, features, distance, alpha=alpha, beta=beta
    )
    # GCN branch uses bf16 MXU operands -> loose tolerance; hom branch is f32.
    assert jnp.allclose(embs_ori, ref_ori, rtol=0.2, atol=0.2)
    assert jnp.allclose(embs_hom, ref_hom, rtol=0.2, atol=0.2)

    print("KERNEL_OK")
</pallas_src>

<mosaic_0001>
module attributes {stable_mosaic.version = 11 : i64} {
  func.func @_fwd1_kernel(%arg0: i32, %arg1: memref<64x64xf32, #tpu.memory_space<vmem>>, %arg2: memref<64x32xf32, #tpu.memory_space<vmem>>, %arg3: memref<64x32xf32, #tpu.memory_space<vmem>>, %arg4: memref<32x32xf32, #tpu.memory_space<vmem>>, %arg5: memref<1x32xf32, #tpu.memory_space<vmem>>, %arg6: memref<32x16xf32, #tpu.memory_space<vmem>>, %arg7: memref<1x16xf32, #tpu.memory_space<vmem>>, %arg8: memref<32x16xf32, #tpu.memory_space<vmem>>, %arg9: memref<1x16xf32, #tpu.memory_space<vmem>>, %arg10: memref<64x16xf32, #tpu.memory_space<vmem>>, %arg11: memref<64x16xf32, #tpu.memory_space<vmem>>, %arg12: memref<16x16xf32, #tpu.memory_space<vmem>>) attributes {dimension_semantics = [#tpu.dimension_semantics<arbitrary>], iteration_bounds = array<i64: 1>, scalar_prefetch = 0 : i64, scratch_operands = 0 : i64, tpu.core_type = #tpu.core_type<tc>, window_params = [{pipeline_mode = #tpu.pipeline_mode<synchronous>, transform_indices = @transform_0, window_bounds = array<i64: 64, 64>}, {pipeline_mode = #tpu.pipeline_mode<synchronous>, transform_indices = @transform_1, window_bounds = array<i64: 64, 32>}, {pipeline_mode = #tpu.pipeline_mode<synchronous>, transform_indices = @transform_2, window_bounds = array<i64: 64, 32>}, {pipeline_mode = #tpu.pipeline_mode<synchronous>, transform_indices = @transform_3, window_bounds = array<i64: 32, 32>}, {pipeline_mode = #tpu.pipeline_mode<synchronous>, transform_indices = @transform_4, window_bounds = array<i64: 1, 32>}, {pipeline_mode = #tpu.pipeline_mode<synchronous>, transform_indices = @transform_5, window_bounds = array<i64: 32, 16>}, {pipeline_mode = #tpu.pipeline_mode<synchronous>, transform_indices = @transform_6, window_bounds = array<i64: 1, 16>}, {pipeline_mode = #tpu.pipeline_mode<synchronous>, transform_indices = @transform_7, window_bounds = array<i64: 32, 16>}, {pipeline_mode = #tpu.pipeline_mode<synchronous>, transform_indices = @transform_8, window_bounds = array<i64: 1, 16>}, {pipeline_mode = #tpu.pipeline_mode<synchronous>, transform_indices = @transform_9, window_bounds = array<i64: 64, 16>}, {pipeline_mode = #tpu.pipeline_mode<synchronous>, transform_indices = @transform_10, window_bounds = array<i64: 64, 16>}, {pipeline_mode = #tpu.pipeline_mode<synchronous>, transform_indices = @transform_11, window_bounds = array<i64: 16, 16>}]} {
    %c0 = arith.constant 0 : index
    %c0_0 = arith.constant 0 : index
    %0 = vector.load %arg1[%c0, %c0_0] : memref<64x64xf32, #tpu.memory_space<vmem>>, vector<64x64xf32>
    %c0_1 = arith.constant 0 : index
    %c0_2 = arith.constant 0 : index
    %1 = vector.load %arg2[%c0_1, %c0_2] : memref<64x32xf32, #tpu.memory_space<vmem>>, vector<64x32xf32>
    %c0_3 = arith.constant 0 : index
    %c0_4 = arith.constant 0 : index
    %2 = vector.load %arg4[%c0_3, %c0_4] : memref<32x32xf32, #tpu.memory_space<vmem>>, vector<32x32xf32>
    %3 = arith.truncf %1 : vector<64x32xf32> to vector<64x32xbf16>
    %4 = arith.truncf %2 : vector<32x32xf32> to vector<32x32xbf16>
    %cst = arith.constant dense<0.000000e+00> : vector<64x32xf32>
    %5 = tpu.matmul %3, %4, %cst {dimension_numbers = #tpu.dot_dimension_numbers<[1], [0], [0], [1], [0, 0, 1, 1], [], []>} : vector<64x32xbf16>, vector<32x32xbf16>, vector<64x32xf32> -> vector<64x32xf32>
    %6 = arith.truncf %0 : vector<64x64xf32> to vector<64x64xbf16>
    %7 = arith.truncf %5 : vector<64x32xf32> to vector<64x32xbf16>
    %cst_5 = arith.constant dense<0.000000e+00> : vector<64x32xf32>
    %8 = tpu.matmul %6, %7, %cst_5 {dimension_numbers = #tpu.dot_dimension_numbers<[1], [0], [0], [1], [0, 0, 1, 1], [], []>} : vector<64x64xbf16>, vector<64x32xbf16>, vector<64x32xf32> -> vector<64x32xf32>
    %c0_6 = arith.constant 0 : index
    %c0_7 = arith.constant 0 : index
    %9 = vector.load %arg5[%c0_6, %c0_7] : memref<1x32xf32, #tpu.memory_space<vmem>>, vector<1x32xf32>
    %10 = vector.broadcast %9 : vector<1x32xf32> to vector<64x32xf32>
    %11 = arith.addf %8, %10 : vector<64x32xf32>
    %cst_8 = arith.constant 0.000000e+00 : f32
    %12 = vector.broadcast %cst_8 : f32 to vector<64x32xf32>
    %13 = arith.maximumf %11, %12 : vector<64x32xf32>
    %c0_9 = arith.constant 0 : index
    %c0_10 = arith.constant 0 : index
    %14 = vector.load %arg6[%c0_9, %c0_10] : memref<32x16xf32, #tpu.memory_space<vmem>>, vector<32x16xf32>
    %15 = arith.truncf %13 : vector<64x32xf32> to vector<64x32xbf16>
    %16 = arith.truncf %14 : vector<32x16xf32> to vector<32x16xbf16>
    %cst_11 = arith.constant dense<0.000000e+00> : vector<64x16xf32>
    %17 = tpu.matmul %15, %16, %cst_11 {dimension_numbers = #tpu.dot_dimension_numbers<[1], [0], [0], [1], [0, 0, 1, 1], [], []>} : vector<64x32xbf16>, vector<32x16xbf16>, vector<64x16xf32> -> vector<64x16xf32>
    %18 = arith.truncf %0 : vector<64x64xf32> to vector<64x64xbf16>
    %19 = arith.truncf %17 : vector<64x16xf32> to vector<64x16xbf16>
    %cst_12 = arith.constant dense<0.000000e+00> : vector<64x16xf32>
    %20 = tpu.matmul %18, %19, %cst_12 {dimension_numbers = #tpu.dot_dimension_numbers<[1], [0], [0], [1], [0, 0, 1, 1], [], []>} : vector<64x64xbf16>, vector<64x16xbf16>, vector<64x16xf32> -> vector<64x16xf32>
    %c0_13 = arith.constant 0 : index
    %c0_14 = arith.constant 0 : index
    %21 = vector.load %arg7[%c0_13, %c0_14] : memref<1x16xf32, #tpu.memory_space<vmem>>, vector<1x16xf32>
    %22 = vector.broadcast %21 : vector<1x16xf32> to vector<64x16xf32>
    %23 = arith.addf %20, %22 : vector<64x16xf32>
    %c0_15 = arith.constant 0 : index
    %c0_16 = arith.constant 0 : index
    %24 = vector.load %arg10[%c0_15, %c0_16] : memref<64x16xf32, #tpu.memory_space<vmem>>, vector<64x16xf32>
    tpu.vector_store %arg10[%c0_15, %c0_16], %23 {strides = array<i32>} : memref<64x16xf32, #tpu.memory_space<vmem>>, vector<64x16xf32>,
    %c0_17 = arith.constant 0 : index
    %c0_18 = arith.constant 0 : index
    %25 = vector.load %arg3[%c0_17, %c0_18] : memref<64x32xf32, #tpu.memory_space<vmem>>, vector<64x32xf32>
    %c0_19 = arith.constant 0 : index
    %c0_20 = arith.constant 0 : index
    %26 = vector.load %arg8[%c0_19, %c0_20] : memref<32x16xf32, #tpu.memory_space<vmem>>, vector<32x16xf32>
    %cst_21 = arith.constant dense<0.000000e+00> : vector<64x16xf32>
    %27 = tpu.matmul %25, %26, %cst_21 {dimension_numbers = #tpu.dot_dimension_numbers<[1], [0], [0], [1], [0, 0, 1, 1], [], []>} : vector<64x32xf32>, vector<32x16xf32>, vector<64x16xf32> -> vector<64x16xf32>
    %c0_22 = arith.constant 0 : index
    %c0_23 = arith.constant 0 : index
    %28 = vector.load %arg9[%c0_22, %c0_23] : memref<1x16xf32, #tpu.memory_space<vmem>>, vector<1x16xf32>
    %29 = vector.broadcast %28 : vector<1x16xf32> to vector<64x16xf32>
    %30 = arith.addf %27, %29 : vector<64x16xf32>
    %c0_24 = arith.constant 0 : index
    %c0_25 = arith.constant 0 : index
    %31 = vector.load %arg11[%c0_24, %c0_25] : memref<64x16xf32, #tpu.memory_space<vmem>>, vector<64x16xf32>
    tpu.vector_store %arg11[%c0_24, %c0_25], %30 {strides = array<i32>} : memref<64x16xf32, #tpu.memory_space<vmem>>, vector<64x16xf32>,
    %cst_26 = arith.constant dense<0.000000e+00> : vector<16x16xf32>
    %32 = tpu.matmul %30, %30, %cst_26 {dimension_numbers = #tpu.dot_dimension_numbers<[0], [0], [1], [1], [0, 1, 1, 1], [], []>} : vector<64x16xf32>, vector<64x16xf32>, vector<16x16xf32> -> vector<16x16xf32>
    %c0_27 = arith.constant 0 : index
    %c0_28 = arith.constant 0 : index
    %33 = vector.load %arg12[%c0_27, %c0_28] : memref<16x16xf32, #tpu.memory_space<vmem>>, vector<16x16xf32>
    tpu.vector_store %arg12[%c0_27, %c0_28], %32 {strides = array<i32>} : memref<16x16xf32, #tpu.memory_space<vmem>>, vector<16x16xf32>,
    return
  }
  func.func @transform_0(%arg0: i32) -> (i32, i32) {
    %c0_i32 = arith.constant 0 : i32
    %c0_i32_0 = arith.constant 0 : i32
    %c0_i32_1 = arith.constant 0 : i32
    return %c0_i32, %c0_i32_0 : i32, i32
  }
  func.func @transform_1(%arg0: i32) -> (i32, i32) {
    %c0_i32 = arith.constant 0 : i32
    %c0_i32_0 = arith.constant 0 : i32
    %c0_i32_1 = arith.constant 0 : i32
    return %c0_i32, %c0_i32_0 : i32, i32
  }
  func.func @transform_2(%arg0: i32) -> (i32, i32) {
    %c0_i32 = arith.constant 0 : i32
    %c0_i32_0 = arith.constant 0 : i32
    %c0_i32_1 = arith.constant 0 : i32
    return %c0_i32, %c0_i32_0 : i32, i32
  }
  func.func @transform_3(%arg0: i32) -> (i32, i32) {
    %c0_i32 = arith.constant 0 : i32
    %c0_i32_0 = arith.constant 0 : i32
    %c0_i32_1 = arith.constant 0 : i32
    return %c0_i32, %c0_i32_0 : i32, i32
  }
  func.func @transform_4(%arg0: i32) -> (i32, i32) {
    %c0_i32 = arith.constant 0 : i32
    %c0_i32_0 = arith.constant 0 : i32
    %c0_i32_1 = arith.constant 0 : i32
    return %c0_i32, %c0_i32_0 : i32, i32
  }
  func.func @transform_5(%arg0: i32) -> (i32, i32) {
    %c0_i32 = arith.constant 0 : i32
    %c0_i32_0 = arith.constant 0 : i32
    %c0_i32_1 = arith.constant 0 : i32
    return %c0_i32, %c0_i32_0 : i32, i32
  }
  func.func @transform_6(%arg0: i32) -> (i32, i32) {
    %c0_i32 = arith.constant 0 : i32
    %c0_i32_0 = arith.constant 0 : i32
    %c0_i32_1 = arith.constant 0 : i32
    return %c0_i32, %c0_i32_0 : i32, i32
  }
  func.func @transform_7(%arg0: i32) -> (i32, i32) {
    %c0_i32 = arith.constant 0 : i32
    %c0_i32_0 = arith.constant 0 : i32
    %c0_i32_1 = arith.constant 0 : i32
    return %c0_i32, %c0_i32_0 : i32, i32
  }
  func.func @transform_8(%arg0: i32) -> (i32, i32) {
    %c0_i32 = arith.constant 0 : i32
    %c0_i32_0 = arith.constant 0 : i32
    %c0_i32_1 = arith.constant 0 : i32
    return %c0_i32, %c0_i32_0 : i32, i32
  }
  func.func @transform_9(%arg0: i32) -> (i32, i32) {
    %c0_i32 = arith.constant 0 : i32
    %c0_i32_0 = arith.constant 0 : i32
    %c0_i32_1 = arith.constant 0 : i32
    return %c0_i32, %c0_i32_0 : i32, i32
  }
  func.func @transform_10(%arg0: i32) -> (i32, i32) {
    %c0_i32 = arith.constant 0 : i32
    %c0_i32_0 = arith.constant 0 : i32
    %c0_i32_1 = arith.constant 0 : i32
    return %c0_i32, %c0_i32_0 : i32, i32
  }
  func.func @transform_11(%arg0: i32) -> (i32, i32) {
    %c0_i32 = arith.constant 0 : i32
    %c0_i32_0 = arith.constant 0 : i32
    %c0_i32_1 = arith.constant 0 : i32
    return %c0_i32, %c0_i32_0 : i32, i32
  }
}

module attributes {stable_mosaic.version = 11 : i64} {
  func.func @_fwd2_kernel(%arg0: i32, %arg1: memref<64x16xf32, #tpu.memory_space<vmem>>, %arg2: memref<16x16xf32, #tpu.memory_space<vmem>>, %arg3: memref<16x16xf32, #tpu.memory_space<vmem>>, %arg4: memref<64x64xf32, #tpu.memory_space<vmem>>, %arg5: memref<64x16xf32, #tpu.memory_space<vmem>>) attributes {dimension_semantics = [#tpu.dimension_semantics<arbitrary>], iteration_bounds = array<i64: 1>, scalar_prefetch = 0 : i64, scratch_operands = 0 : i64, tpu.core_type = #tpu.core_type<tc>, window_params = [{pipeline_mode = #tpu.pipeline_mode<synchronous>, transform_indices = @transform_0, window_bounds = array<i64: 64, 16>}, {pipeline_mode = #tpu.pipeline_mode<synchronous>, transform_indices = @transform_1, window_bounds = array<i64: 16, 16>}, {pipeline_mode = #tpu.pipeline_mode<synchronous>, transform_indices = @transform_2, window_bounds = array<i64: 16, 16>}, {pipeline_mode = #tpu.pipeline_mode<synchronous>, transform_indices = @transform_3, window_bounds = array<i64: 64, 64>}, {pipeline_mode = #tpu.pipeline_mode<synchronous>, transform_indices = @transform_4, window_bounds = array<i64: 64, 16>}]} {
    %c0 = arith.constant 0 : index
    %c0_0 = arith.constant 0 : index
    %0 = vector.load %arg1[%c0, %c0_0] : memref<64x16xf32, #tpu.memory_space<vmem>>, vector<64x16xf32>
    %c0_1 = arith.constant 0 : index
    %c0_2 = arith.constant 0 : index
    %1 = vector.load %arg3[%c0_1, %c0_2] : memref<16x16xf32, #tpu.memory_space<vmem>>, vector<16x16xf32>
    %c0_3 = arith.constant 0 : index
    %c0_4 = arith.constant 0 : index
    %2 = vector.load %arg2[%c0_3, %c0_4] : memref<16x16xf32, #tpu.memory_space<vmem>>, vector<16x16xf32>
    %cst = arith.constant dense<0.000000e+00> : vector<16x16xf32>
    %3 = tpu.matmul %1, %2, %cst {dimension_numbers = #tpu.dot_dimension_numbers<[1], [0], [0], [1], [0, 0, 1, 1], [], []>} : vector<16x16xf32>, vector<16x16xf32>, vector<16x16xf32> -> vector<16x16xf32>
    %cst_5 = arith.constant 1.000000e+00 : f32
    %4 = vector.broadcast %cst_5 : f32 to vector<64x16xf32>
    %5 = arith.mulf %4, %0 : vector<64x16xf32>
    %cst_6 = arith.constant dense<0.000000e+00> : vector<64x16xf32>
    %6 = tpu.matmul %0, %3, %cst_6 {dimension_numbers = #tpu.dot_dimension_numbers<[1], [0], [0], [1], [0, 0, 1, 1], [], []>} : vector<64x16xf32>, vector<16x16xf32>, vector<64x16xf32> -> vector<64x16xf32>
    %cst_7 = arith.constant 1.000000e+00 : f32
    %7 = vector.broadcast %cst_7 : f32 to vector<64x16xf32>
    %8 = arith.mulf %7, %6 : vector<64x16xf32>
    %9 = arith.subf %5, %8 : vector<64x16xf32>
    %cst_8 = arith.constant dense<0.000000e+00> : vector<16x16xf32>
    %10 = tpu.matmul %0, %9, %cst_8 {dimension_numbers = #tpu.dot_dimension_numbers<[0], [0], [1], [1], [0, 1, 1, 1], [], []>} : vector<64x16xf32>, vector<64x16xf32>, vector<16x16xf32> -> vector<16x16xf32>
    %cst_9 = arith.constant dense<0.000000e+00> : vector<64x16xf32>
    %11 = tpu.matmul %0, %10, %cst_9 {dimension_numbers = #tpu.dot_dimension_numbers<[1], [0], [0], [1], [0, 0, 1, 1], [], []>} : vector<64x16xf32>, vector<16x16xf32>, vector<64x16xf32> -> vector<64x16xf32>
    %c0_10 = arith.constant 0 : index
    %c0_11 = arith.constant 0 : index
    %12 = vector.load %arg4[%c0_10, %c0_11] : memref<64x64xf32, #tpu.memory_space<vmem>>, vector<64x64xf32>
    %cst_12 = arith.constant dense<0.000000e+00> : vector<64x16xf32>
    %13 = tpu.matmul %12, %9, %cst_12 {dimension_numbers = #tpu.dot_dimension_numbers<[1], [0], [0], [1], [0, 0, 1, 1], [], []>} : vector<64x64xf32>, vector<64x16xf32>, vector<64x16xf32> -> vector<64x16xf32>
    %cst_13 = arith.constant 2.500000e-01 : f32
    %14 = vector.broadcast %cst_13 : f32 to vector<64x16xf32>
    %15 = arith.mulf %14, %13 : vector<64x16xf32>
    %16 = arith.subf %11, %15 : vector<64x16xf32>
    %c0_14 = arith.constant 0 : index
    %c0_15 = arith.constant 0 : index
    %17 = vector.load %arg5[%c0_14, %c0_15] : memref<64x16xf32, #tpu.memory_space<vmem>>, vector<64x16xf32>
    tpu.vector_store %arg5[%c0_14, %c0_15], %16 {strides = array<i32>} : memref<64x16xf32, #tpu.memory_space<vmem>>, vector<64x16xf32>,
    return
  }
  func.func @transform_0(%arg0: i32) -> (i32, i32) {
    %c0_i32 = arith.constant 0 : i32
    %c0_i32_0 = arith.constant 0 : i32
    %c0_i32_1 = arith.constant 0 : i32
    return %c0_i32, %c0_i32_0 : i32, i32
  }
  func.func @transform_1(%arg0: i32) -> (i32, i32) {
    %c0_i32 = arith.constant 0 : i32
    %c0_i32_0 = arith.constant 0 : i32
    %c0_i32_1 = arith.constant 0 : i32
    return %c0_i32, %c0_i32_0 : i32, i32
  }
  func.func @transform_2(%arg0: i32) -> (i32, i32) {
    %c0_i32 = arith.constant 0 : i32
    %c0_i32_0 = arith.constant 0 : i32
    %c0_i32_1 = arith.constant 0 : i32
    return %c0_i32, %c0_i32_0 : i32, i32
  }
  func.func @transform_3(%arg0: i32) -> (i32, i32) {
    %c0_i32 = arith.constant 0 : i32
    %c0_i32_0 = arith.constant 0 : i32
    %c0_i32_1 = arith.constant 0 : i32
    return %c0_i32, %c0_i32_0 : i32, i32
  }
  func.func @transform_4(%arg0: i32) -> (i32, i32) {
    %c0_i32 = arith.constant 0 : i32
    %c0_i32_0 = arith.constant 0 : i32
    %c0_i32_1 = arith.constant 0 : i32
    return %c0_i32, %c0_i32_0 : i32, i32
  }
}

</mosaic_0001>

<bundles_post_ra>
// kernel: custom-call.11
= control target key start
LH: loop header
LB: loop body
LE: loop exit
PB: predicated region body
PF: predicated region fallthrough
CT: control target
= control target key end

     0   :  { %5 = vsyncpa [#allocation4], 0  ;;  %s873_s0 = inlined_call_operand.vmem [shape: f32[16,16], index: 0, kind: input, shape index: {}]   ;;  %s874_s1 = inlined_call_operand.vmem [shape: f32[16,16], index: 1, kind: output, shape index: {0}]   ;;  %s875_s2 = inlined_call_operand.hbm [shape: s32[16], index: 2, kind: output, shape index: {1}]   ;;  %s876_s3 = inlined_call_operand.vmem [shape: s32[16], index: 3, kind: output, shape index: {2}]  }
   0x1   :  { %s19_s14 = scalar_lea.vmem %s873_s0, 8 }
   0x2   :  { %p461_p0 = scmp.gt.s32.totalorder %s873_s0, %s19_s14 }
   0x3   :  { %s752_s17 = smov (!%p461_p0), [#allocation0]   ;;  %s756_s20 = smov (!%p461_p0), %s873_s0  }
   0x4   :  { %462 = sbr.rel (%p461_p0) target bundleno = 17 (0x11), region = 157 }
   0x9 LB: > { %v53_v0 = vld [vmem:[%s758_s20] sm:$0xff]  ;;  %s55_s20 = scalar_lea.vmem %s758_s20, 8   ;;  %s758_s20 = sphi %s756_s20, %s55_s20   ;;  %s754_s17 = sphi %s752_s17, %s56_s17  }
   0xa   : > { %54 = vst [vmem:[%s754_s17] sm:$0xff] %v53_v0  ;;  %s56_s17 = scalar_lea.vmem %s754_s17, 8   ;;  %p50_p1 = scmp.gt.s32.totalorder %s55_s20, %s19_s14 }
   0xc   :  { %52 = sbr.rel (!%p50_p1) target bundleno = 9 (0x9), region = 163 }
  0x11 PF:  { %v69_v1 = vld [vmem:[#allocation0] sm:$0xff]  ;;  %v73_v2 = vld [vmem:[#allocation0 + $0x8] sm:$0xff]  ;;  %v76_v3 = vlaneseq  ;;  %v776_v4 = vmov 0   ;;  %s760_s0 = smov 0  }
  0x12   :  { %70 = vst [vmem:[#allocation1] sm:$0xff] %v69_v1  ;;  %74 = vst [vmem:[#allocation1 + $0x8] sm:$0xff] %v73_v2 }
  0x13   :  { %75 = vst [vmem:[#allocation2] sm:$0x1] %v776_v4  ;;  %v808_v5 = vshrl.u32 %v76_v3, 7 }
  0x14 LB: > { %s519_s21 = sshll.u32 %s762_s0, 3  ;;  %s84_s0 = sadd.s32 1, %s762_s0   ;;  %s762_s0 = sphi %s760_s0, %s84_s0  }
  0x15   : > { %v88_v6 = vstv %s519_s21  ;;  %s86_s22 = scalar_lea.vmem [#allocation7], %s519_s21  ;;  %p81_p2 = scmp.ge.s32.totalorder %s84_s0, 2  }
  0x16   : > { %v89_v7 = vadd.s32 %v88_v6, %v808_v5  ;;  %s811_s23 = smov (%p81_p2), 0  }
  0x17   :  { %83 = sbr.rel (!%p81_p2) target bundleno = 20 (0x14), region = 174 }
  0x18   : > { %90 = vst [vmem:[%s86_s22] sm:$0xff] %v89_v7 }
  0x1c LB: > { %v101_v8 = vld [vmem:[#allocation1] sm:$0xff]  ;;  %v113_v9 = vld [vmem:[#allocation1 + $0x8] sm:$0xff]  ;;  %v817_v10 = vadd.s32 8, %v808_v5  ;;  %v820_v12 = vstv %s766_s23  ;;  %s159_s24 = ssub.s32 128, %s766_s23  ;;  %v165_v45 = vand.u32 127, %v76_v3  ;;  %s171_s25 = scalar_lea.vmem [#allocation1], %s766_s23  ;;  %s766_s23 = sphi %s811_s23, %s96_s23  }
  0x1d   : > { %v102_v11 = vand.u32 2147483647, %v101_v8  ;;  %v114_v13 = vand.u32 2147483647, %v113_v9  ;;  %vm105_vm0 = vcmp.ge.s32.totalorder %v808_v5, %v820_v12  ;;  %v168_v48 = vld [vmem:[#allocation2] ss:$0 sm:$0xff] }
  0x1e   : > { %vm117_vm3 = vcmp.ge.s32.totalorder %v817_v10, %v820_v12  ;;  %vm189_vm13 = vcmp.gt.s32.totalorder %v165_v45, %v820_v12  ;;  %vm212_vm14 = vcmp.gt.s32.totalorder %v817_v10, %v820_v12  ;;  %vm166_vm15 = vcmp.eq.s32.totalorder %v165_v45, %v820_v12  ;;  %v173_v49 = vld [vmem:[%s171_s25] ss:$0 sm:$0xff]  ;;  %s177_s27 = scalar_lea.vmem [#allocation7], %s766_s23  ;;  %s96_s23 = sadd.s32 1, %s766_s23  }
  0x1f   : > { %vm521_vm1 = vcmp.gt.f32.partialorder %v102_v11, -inf  ;;  %v179_v50 = vld [vmem:[%s177_s27] ss:$0 sm:$0xff]  ;;  %p93_p3 = scmp.ge.s32.totalorder %s96_s23, 16  }
  0x20   : > { %vm109_vm2 = vmand %vm105_vm0, %vm521_vm1  ;;  %s768_s5 = smov (%p93_p3), %s874_s1   ;;  %s772_s6 = smov (%p93_p3), [#allocation1]  }
  0x21   : > { %v110_v14 = vsel %vm109_vm2, %v808_v5, %v820_v12  ;;  %v111_v15 = vsel %vm109_vm2, %v102_v11, -inf  ;;  %vm840_vm0 = vmand %vm212_vm14, %vm166_vm15  ;;  %vm197_vm2 = vcmp.gt.s32.totalorder %v808_v5, %v820_v12 }
  0x22   : > { %vm120_vm4 = vcmp.lt.f32.partialorder %v111_v15, %v114_v13 }
  0x23   : > { %vm121_vm5 = vmand %vm117_vm3, %vm120_vm4 }
  0x24   : > { %v122_v16 = vsel %vm121_vm5, %v817_v10, %v110_v14  ;;  %v123_v17 = vsel %vm121_vm5, %v114_v13, %v111_v15  ;;  %vm201_vm4 = vmand %vm197_vm2, %vm166_vm15 }
  0x25   : > { %v124_v18 = vrot.slane %v123_v17, 1  ;;  %v125_v19 = vrot.slane %v122_v16, 1 }
  0x27   : > { %vm126_vm6 = vcmp.ge.f32.partialorder %v124_v18, %v123_v17  ;;  %v129_v20 = vrot.slane %v124_v18, 1  ;;  %v130_v21 = vrot.slane %v125_v19, 1 }
  0x28   : > { %v127_v22 = vsel %vm126_vm6, %v124_v18, %v123_v17  ;;  %v128_v23 = vsel %vm126_vm6, %v125_v19, %v122_v16 }
  0x29   : > { %vm131_vm7 = vcmp.ge.f32.partialorder %v129_v20, %v127_v22  ;;  %v134_v24 = vrot.slane %v129_v20, 1  ;;  %v135_v25 = vrot.slane %v130_v21, 1 }
  0x2a   : > { %v132_v26 = vsel %vm131_vm7, %v129_v20, %v127_v22  ;;  %v133_v27 = vsel %vm131_vm7, %v130_v21, %v128_v23 }
  0x2b   : > { %vm136_vm8 = vcmp.ge.f32.partialorder %v134_v24, %v132_v26  ;;  %v139_v28 = vrot.slane %v134_v24, 1  ;;  %v140_v29 = vrot.slane %v135_v25, 1 }
  0x2c   : > { %v137_v30 = vsel %vm136_vm8, %v134_v24, %v132_v26  ;;  %v138_v31 = vsel %vm136_vm8, %v135_v25, %v133_v27 }
  0x2d   : > { %vm141_vm9 = vcmp.ge.f32.partialorder %v139_v28, %v137_v30  ;;  %v144_v32 = vrot.slane %v139_v28, 1  ;;  %v145_v33 = vrot.slane %v140_v29, 1 }
  0x2e   : > { %v142_v34 = vsel %vm141_vm9, %v139_v28, %v137_v30  ;;  %v143_v35 = vsel %vm141_vm9, %v140_v29, %v138_v31 }
  0x2f   : > { %vm146_vm10 = vcmp.ge.f32.partialorder %v144_v32, %v142_v34  ;;  %v149_v36 = vrot.slane %v144_v32, 1  ;;  %v150_v37 = vrot.slane %v145_v33, 1 }
  0x30   : > { %v147_v38 = vsel %vm146_vm10, %v144_v32, %v142_v34  ;;  %v148_v39 = vsel %vm146_vm10, %v145_v33, %v143_v35 }
  0x31   : > { %vm151_vm11 = vcmp.ge.f32.partialorder %v149_v36, %v147_v38  ;;  %v154_v40 = vrot.slane %v149_v36, 1  ;;  %v155_v41 = vrot.slane %v150_v37, 1 }
  0x32   : > { %v152_v42 = vsel %vm151_vm11, %v149_v36, %v147_v38  ;;  %v153_v43 = vsel %vm151_vm11, %v150_v37, %v148_v39 }
  0x33   : > { %vm156_vm12 = vcmp.ge.f32.partialorder %v154_v40, %v152_v42 }
  0x34   : > { %v158_v44 = vsel %vm156_vm12, %v155_v41, %v153_v43 }
  0x35   : > { %160 = vrot.lane.b32.xlu0 %v158_v44, %s159_s24 }
  0xa7   : > { %v161_v47 = vpop.permute.xlu0 %160 }
  0xa8   : > { %529 = vpush %v161_v47 }
  0xd9   : > { %s530_s26 = spop %529 }
  0xda   : > { %v167_v51 = vstv %s530_s26  ;;  %s172_s28 = scalar_lea.vmem [#allocation1], %s530_s26  ;;  %s178_s29 = scalar_lea.vmem [#allocation7], %s530_s26 }
  0xdb   : > { %v169_v52 = vsel %vm166_vm15, %v167_v51, %v168_v48  ;;  %v174_v53 = vld [vmem:[%s172_s28] ss:$0 sm:$0xff] }
  0xdc   : > { %v180_v54 = vld [vmem:[%s178_s29] ss:$0 sm:$0xff]  ;;  %170 = vst [vmem:[#allocation2] sm:$0x1] %v169_v52  ;;  %175 = vst [vmem:[%s172_s28] sm:$0x1] %v173_v49  ;;  %vm183_vm1 = vcmp.ne.f32.partialorder %v174_v53, 0.0 }
  0xdd   : > { %181 = vst [vmem:[%s178_s29] sm:$0x1] %v179_v50  ;;  %176 = vst [vmem:[%s171_s25] sm:$0x1] %v174_v53  ;;  %v190_v2 = vsel %vm189_vm13, %v174_v53, 0.0 }
  0xde   : > { %182 = vst [vmem:[%s177_s27] sm:$0x1] %v180_v54  ;;  %vm184_vm3 = vmand %vm166_vm15, %vm183_vm1 }
  0xdf   : > { %v185_v55 = vsel %vm184_vm3, %v174_v53, 1.0 }
  0xe0   : > { %v213_v56 = vsel %vm212_vm14, %v185_v55, 1.0  ;;  %v198_v57 = vsel %vm197_vm2, %v185_v55, 1.0 }
  0xe1   : > { %662 = vrcp.f32 %v213_v56 }
  0xe2   : > { %664 = vrcp.f32 %v198_v57 }
  0xe3   :  { %v277_v12 = vld [vmem:[#allocation2] sm:$0x1] (%p93_p3) }
  0xe4   : > { %v209_v59 = vld [vmem:[#allocation1 + $0x8] sm:$0xff]  ;;  %v194_v62 = vld [vmem:[#allocation1] sm:$0xff]  ;;  %280 = vst [vmem:[#allocation3] sm:$0x1] (%p93_p3), %v277_v12 }
  0xe5   :  { %v223_v11 = vld [vmem:[#allocation7] sm:$0xff] (%p93_p3)  ;;  %v225_v13 = vld [vmem:[#allocation7 + $0x8] sm:$0xff] (%p93_p3) }
  0xee   : > { %v663_v58 = vpop.eup %662 }
  0xef   : > { %v665_v60 = vpop.eup %664  ;;  %v215_v61 = vmul.f32 %v663_v58, %v209_v59 }
  0xf0   : > { %v200_v63 = vmul.f32 %v665_v60, %v194_v62 }
  0xf1   : > { %v217_v0 = vsel %vm840_vm0, %v215_v61, 0.0 }
  0xf2   : > { %218 = vadd.xlane.f32.xlu1 %v217_v0  ;;  %v202_v1 = vsel %vm201_vm4, %v200_v63, 0.0 }
  0xf3   : > { %203 = vadd.xlane.f32.xlu0 %v202_v1 }
 0x120   :  { %240 = vxpose.xlu0.b32.start [1/2] (short) (narrow) (%p93_p3), %v223_v11, 8 }
 0x124   :  { %241 = vxpose.xlu0.b32.end [2/2] (short) (narrow) (%p93_p3), %v225_v13, 8 }
 0x17b   : > { %v219_v4 = vpop.xlane.xlu1 %218 }
 0x17c   : > { %v220_v6 = vmul.f32 %v219_v4, %v190_v2  ;;  %v204_v7 = vpop.xlane.xlu0 %203 }
 0x17d   : > { %v205_v8 = vmul.f32 %v204_v7, %v190_v2  ;;  %95 = sbr.rel (!%p93_p3) target bundleno = 28 (0x1c), region = 185 }
 0x17e   : > { %v221_v9 = vsub.f32 %v215_v61, %v220_v6 }
 0x17f   : > { %v206_v10 = vsub.f32 %v200_v63, %v205_v8 }
 0x180   : > { %222 = vst [vmem:[#allocation1 + $0x8] sm:$0xff] %v221_v9 }
 0x181   : > { %207 = vst [vmem:[#allocation1] sm:$0xff] %v206_v10 }
 0x19c   :  { %v256_v14 = vpop.trf.xlu0 }
 0x19d   :  { %272 = vst [vmem:[#allocation5] sm:$0x1] %v256_v14 }
 0x1a4   :  { %v285_v15 = vld [vmem:[#allocation5] sm:$0x1] }
 0x1a5   :  { %288 = vst [vmem:[#allocation6] sm:$0x1] %v285_v15 }
 0x1a6 LB: > { %v336_v16 = vld [vmem:[%s774_s6] sm:$0xff]  ;;  %s338_s6 = scalar_lea.vmem %s774_s6, 8   ;;  %s774_s6 = sphi %s772_s6, %s338_s6   ;;  %s770_s5 = sphi %s768_s5, %s339_s5  }
 0x1a7   : > { %337 = vst [vmem:[%s770_s5] sm:$0xff] %v336_v16  ;;  %s339_s5 = scalar_lea.vmem %s770_s5, 8   ;;  %p333_p4 = scmp.gt.s32.totalorder %s338_s6, [#allocation1 + $0x8] }
 0x1a8   :  { %s777_s7 = smov (%p333_p4), [#allocation3]  }
 0x1a9   :  { %335 = sbr.rel (!%p333_p4) target bundleno = 422 (0x1a6), region = 207  ;;  %s357_s8 = sshll.u32 (%p333_p4), %s777_s7, 4  ;;  %s358_s8 = int_to_ptr.vmem [resolvable:$true] %s357_s8 }
 0x1aa   :  { %s666_s1 = scalar_lea.vmem (%p333_p4), %s358_s8, 16  ;;  %s670_s11 = scalar_lea.vmem (%p333_p4), %s358_s8, 32 }
 0x1ab   :  { %p667_p5 = scmp.ne.s32.totalorder (%p333_p4), %s358_s8, %s666_s1  ;;  %p671_p6 = scmp.lt.s32.totalorder (%p333_p4), %s358_s8, %s358_s8 }
 0x1ac   :  { %v424_v3 = vld [vmem:[#allocation6] sm:$0x1] (%p333_p4)  ;;  %p672_p7 = scmp.lt.s32.totalorder (%p333_p4), %s670_s11, %s666_s1 }
 0x1ad   :  { %425 = vst [vmem:[%s876_s3] sm:$0x1] (%p333_p4), %v424_v3 }
 0x1ae   :  { %p673_p8 = por %p672_p7, %p671_p6 }
 0x1b0   :  { %p674_p9 = pnand %p673_p8, %p667_p5 }
 0x1b2   :  { %677 = shalt.err (!%p674_p9)
}
 0x1b3   :  { %360 = dma.vmem_to_hbm [thread:$0]  %s358_s8, 16, %s875_s2, [#allocation4]  }
 0x1b4   :  { %750 = dma.done.wait [#allocation4], 16  }
 0x1b5   :  { %751 = vsyncadd [#allocation4], 4294967280 }
 0x1b6   :  { %431 = vsyncpa [#allocation4], 1 }

// kernel: custom-call.13
= control target key start
LH: loop header
LB: loop body
LE: loop exit
PB: predicated region body
PF: predicated region fallthrough
CT: control target
= control target key end

     0   :  { %v39_v0 = vlaneseq  ;;  %v334_v9 = vmov -1.0   ;;  %v335_v53 = vmov 0.0   ;;  %s403_s0 = inlined_call_operand.vmem [shape: f32[1,16,16], index: 0, kind: input, shape index: {}]   ;;  %s404_s1 = inlined_call_operand.vmem [shape: f32[1,16,16], index: 1, kind: output, shape index: {}]  }
   0x1   :  { %v32_v1 = vld [vmem:[%s403_s0] sm:$0xff]  ;;  %v34_v36 = vld [vmem:[%s403_s0 + $0x8] sm:$0xff] }
   0x2   :  { %v349_v2 = vand.u32 127, %v39_v0  ;;  %v43_v3 = vshrl.u32 %v39_v0, 7 }
   0x4   :  { %vm45_vm0 = vcmp.eq.s32.totalorder %v43_v3, %v349_v2  ;;  %vm41_vm1 = vcmp.lt.s32.totalorder %v349_v2, 16  ;;  %vm50_vm2 = vcmp.ge.s32.totalorder %v43_v3, %v349_v2  ;;  %vm80_vm4 = vcmp.eq.s32.totalorder %v349_v2, 0 }
   0x5   :  { %v47_v4 = vsel %vm45_vm0, %v32_v1, 0.0  ;;  %vm51_vm3 = vmand %vm50_vm2, %vm41_vm1  ;;  %vm77_vm5 = vcmp.eq.s32.totalorder %v349_v2, %v43_v3  ;;  %v81_v10 = vsel %vm80_vm4, 1.0, %v334_v9  ;;  %vm95_vm6 = vcmp.eq.s32.totalorder %v349_v2, 1 }
   0x6   :  { %48 = vadd.xlane.f32.xlu0 %v47_v4  ;;  %v52_v6 = vsel %vm51_vm3, %v32_v1, 0.0  ;;  %v82_v11 = vsel %vm77_vm5, %v81_v10, 0.0  ;;  %vm105_vm7 = vcmp.eq.s32.totalorder %v349_v2, 2  ;;  %vm115_vm8 = vcmp.eq.s32.totalorder %v349_v2, 3 }
   0x7   :  { %vm125_vm9 = vcmp.eq.s32.totalorder %v349_v2, 4  ;;  %v60_v31 = vadd.s32 8, %v43_v3  ;;  %vm135_vm11 = vcmp.eq.s32.totalorder %v349_v2, 5  ;;  %vm145_vm14 = vcmp.eq.s32.totalorder %v349_v2, 6 }
   0x8   :  { %vm155_vm0 = vcmp.eq.s32.totalorder %v349_v2, 7  ;;  %vm179_vm2 = vcmp.eq.s32.totalorder %v349_v2, 9  ;;  %vm193_vm3 = vcmp.eq.s32.totalorder %v349_v2, 10  ;;  %vm207_vm4 = vcmp.eq.s32.totalorder %v349_v2, 11 }
   0x9   :  { %vm61_vm10 = vcmp.eq.s32.totalorder %v60_v31, %v349_v2  ;;  %vm66_vm12 = vcmp.ge.s32.totalorder %v60_v31, %v349_v2  ;;  %vm88_vm15 = vcmp.eq.s32.totalorder %v349_v2, %v60_v31  ;;  %vm221_vm5 = vcmp.eq.s32.totalorder %v349_v2, 12 }
   0xa   :  { %v63_v37 = vsel %vm61_vm10, %v34_v36, 0.0  ;;  %vm67_vm13 = vmand %vm66_vm12, %vm41_vm1  ;;  %v89_v54 = vsel %vm88_vm15, -1.0, %v335_v53  ;;  %vm165_vm1 = vcmp.eq.s32.totalorder %v349_v2, 8 }
   0xb   :  { %v68_v44 = vsel %vm67_vm13, %v34_v36, 0.0 }
  0x8f   :  { %v352_v5 = vpop.xlane.xlu0 %48 }
  0x90   :  { %330 = vrcp.f32 %v352_v5  ;;  %vm274_vm10 = vweird.f32 %v352_v5 }
  0x9d   :  { %v359_v7 = vpop.eup %330 }
  0x9e   :  { %v54_v8 = vmul.f32 %v359_v7, %v52_v6 }
  0xa0   :  { %55 = vst [vmem:[#allocation2] sm:$0xff] %v54_v8 }
  0xa7   :  { %v91_v12 = vld [vmem:[#allocation2 + $0x1] ss:$0 sm:$0xff]  ;;  %v101_v15 = vld [vmem:[#allocation2 + $0x2] ss:$0 sm:$0xff]  ;;  %v111_v20 = vld [vmem:[#allocation2 + $0x3] ss:$0 sm:$0xff] }
  0xa8   :  { %v92_v13 = vxor.u32 2147483648, %v91_v12  ;;  %v102_v17 = vxor.u32 2147483648, %v101_v15  ;;  %v112_v22 = vxor.u32 2147483648, %v111_v20  ;;  %v121_v25 = vld [vmem:[#allocation2 + $0x4] ss:$0 sm:$0xff] }
  0xa9   :  { %v122_v27 = vxor.u32 2147483648, %v121_v25  ;;  %v131_v30 = vld [vmem:[#allocation2 + $0x5] ss:$0 sm:$0xff]  ;;  %v141_v38 = vld [vmem:[#allocation2 + $0x6] ss:$0 sm:$0xff] }
  0xaa   :  { %v96_v14 = vmul.f32 %v92_v13, %v82_v11  ;;  %v132_v33 = vxor.u32 2147483648, %v131_v30  ;;  %v142_v40 = vxor.u32 2147483648, %v141_v38  ;;  %v151_v47 = vld [vmem:[#allocation2 + $0x7] ss:$0 sm:$0xff] }
  0xab   :  { %v152_v50 = vxor.u32 2147483648, %v151_v47 }
  0xac   :  { %97 = vadd.xlane.f32.xlu0 %v96_v14 }
 0x135   :  { %v98_v16 = vpop.xlane.xlu0 %97 }
 0x136   :  { %v99_v18 = vsel %vm95_vm6, %v98_v16, %v82_v11  ;;  %vm235_vm6 = vcmp.eq.s32.totalorder %v349_v2, 13 }
 0x137   :  { %v106_v19 = vmul.f32 %v102_v17, %v99_v18 }
 0x139   :  { %107 = vadd.xlane.f32.xlu1 %v106_v19 }
 0x1c2   :  { %v108_v21 = vpop.xlane.xlu1 %107 }
 0x1c3   :  { %v109_v23 = vsel %vm105_vm7, %v108_v21, %v99_v18  ;;  %vm249_vm7 = vcmp.eq.s32.totalorder %v349_v2, 14 }
 0x1c4   :  { %v116_v24 = vmul.f32 %v112_v22, %v109_v23 }
 0x1c6   :  { %117 = vadd.xlane.f32.xlu1 %v116_v24 }
 0x24f   :  { %v118_v26 = vpop.xlane.xlu1 %117 }
 0x250   :  { %v119_v28 = vsel %vm115_vm8, %v118_v26, %v109_v23  ;;  %vm263_vm8 = vcmp.eq.s32.totalorder %v349_v2, 15 }
 0x251   :  { %v126_v29 = vmul.f32 %v122_v27, %v119_v28 }
 0x253   :  { %127 = vadd.xlane.f32.xlu0 %v126_v29 }
 0x2dc   :  { %v128_v32 = vpop.xlane.xlu0 %127 }
 0x2dd   :  { %v129_v34 = vsel %vm125_vm9, %v128_v32, %v119_v28 }
 0x2de   :  { %v136_v35 = vmul.f32 %v132_v33, %v129_v34 }
 0x2e0   :  { %137 = vadd.xlane.f32.xlu1 %v136_v35 }
 0x2e4   :  { %64 = vadd.xlane.f32.xlu1 %v63_v37 }
 0x369   :  { %v138_v39 = vpop.xlane.xlu1 %137 }
 0x36a   :  { %v139_v41 = vsel %vm135_vm11, %v138_v39, %v129_v34 }
 0x36b   :  { %v146_v42 = vmul.f32 %v142_v40, %v139_v41 }
 0x36d   :  { %147 = vadd.xlane.f32.xlu0 %v146_v42  ;;  %v373_v43 = vpop.xlane.xlu1 %64 }
 0x36e   :  { %332 = vrcp.f32 %v373_v43  ;;  %vm279_vm9 = vweird.f32 %v373_v43 }
 0x37b   :  { %v379_v45 = vpop.eup %332 }
 0x37c   :  { %v70_v46 = vmul.f32 %v379_v45, %v68_v44 }
 0x37e   :  { %71 = vst [vmem:[#allocation2 + $0x8] sm:$0xff] %v70_v46 }
 0x385   :  { %v161_v48 = vld [vmem:[#allocation2 + $0x8] ss:$0 sm:$0xff]  ;;  %v175_v59 = vld [vmem:[#allocation2 + $0x9] ss:$0 sm:$0xff]  ;;  %v189_v4 = vld [vmem:[#allocation2 + $0xa] ss:$0 sm:$0xff] }
 0x386   :  { %v162_v51 = vxor.u32 2147483648, %v161_v48  ;;  %v176_v62 = vxor.u32 2147483648, %v175_v59  ;;  %v190_v9 = vxor.u32 2147483648, %v189_v4  ;;  %v203_v14 = vld [vmem:[#allocation2 + $0xb] ss:$0 sm:$0xff] }
 0x387   :  { %v204_v17 = vxor.u32 2147483648, %v203_v14  ;;  %v217_v22 = vld [vmem:[#allocation2 + $0xc] ss:$0 sm:$0xff]  ;;  %v231_v30 = vld [vmem:[#allocation2 + $0xd] ss:$0 sm:$0xff] }
 0x388   :  { %v170_v56 = vmul.f32 %v162_v51, %v89_v54  ;;  %v218_v25 = vxor.u32 2147483648, %v217_v22  ;;  %v232_v33 = vxor.u32 2147483648, %v231_v30  ;;  %v245_v38 = vld [vmem:[#allocation2 + $0xe] ss:$0 sm:$0xff]  ;;  %v259_v48 = vld [vmem:[#allocation2 + $0xf] ss:$0 sm:$0xff] }
 0x3f6   :  { %v148_v49 = vpop.xlane.xlu0 %147 }
 0x3f7   :  { %v149_v52 = vsel %vm145_vm14, %v148_v49, %v139_v41  ;;  %v246_v41 = vxor.u32 2147483648, %v245_v38 }
 0x3f8   :  { %v156_v55 = vmul.f32 %v152_v50, %v149_v52 }
 0x3fa   :  { %157 = vadd.xlane.f32.xlu0 %v156_v55 }
 0x3fe   :  { %171 = vadd.xlane.f32.xlu0 %v170_v56 }
 0x483   :  { %v158_v57 = vpop.xlane.xlu0 %157 }
 0x484   :  { %v159_v58 = vsel %vm155_vm0, %v158_v57, %v149_v52 }
 0x485   :  { %v166_v60 = vmul.f32 %v162_v51, %v159_v58  ;;  %v260_v51 = vxor.u32 2147483648, %v259_v48 }
 0x487   :  { %v172_v61 = vpop.xlane.xlu0 %171  ;;  %167 = vadd.xlane.f32.xlu1 %v166_v60 }
 0x488   :  { %v173_v63 = vsel %vm165_vm1, %v172_v61, %v89_v54 }
 0x489   :  { %v184_v0 = vmul.f32 %v176_v62, %v173_v63 }
 0x48b   :  { %185 = vadd.xlane.f32.xlu0 %v184_v0 }
 0x510   :  { %v168_v1 = vpop.xlane.xlu1 %167 }
 0x511   :  { %v169_v3 = vsel %vm165_vm1, %v168_v1, %v159_v58 }
 0x512   :  { %v180_v6 = vmul.f32 %v176_v62, %v169_v3 }
 0x514   :  { %v186_v8 = vpop.xlane.xlu0 %185  ;;  %181 = vadd.xlane.f32.xlu1 %v180_v6 }
 0x515   :  { %v187_v10 = vsel %vm179_vm2, %v186_v8, %v173_v63 }
 0x516   :  { %v198_v11 = vmul.f32 %v190_v9, %v187_v10 }
 0x518   :  { %199 = vadd.xlane.f32.xlu0 %v198_v11 }
 0x59d   :  { %v182_v12 = vpop.xlane.xlu1 %181 }
 0x59e   :  { %v183_v13 = vsel %vm179_vm2, %v182_v12, %v169_v3 }
 0x59f   :  { %v194_v15 = vmul.f32 %v190_v9, %v183_v13 }
 0x5a1   :  { %v200_v16 = vpop.xlane.xlu0 %199  ;;  %195 = vadd.xlane.f32.xlu1 %v194_v15 }
 0x5a2   :  { %v201_v18 = vsel %vm193_vm3, %v200_v16, %v187_v10 }
 0x5a3   :  { %v212_v19 = vmul.f32 %v204_v17, %v201_v18 }
 0x5a5   :  { %213 = vadd.xlane.f32.xlu0 %v212_v19 }
 0x62a   :  { %v196_v20 = vpop.xlane.xlu1 %195 }
 0x62b   :  { %v197_v21 = vsel %vm193_vm3, %v196_v20, %v183_v13 }
 0x62c   :  { %v208_v23 = vmul.f32 %v204_v17, %v197_v21 }
 0x62e   :  { %v214_v24 = vpop.xlane.xlu0 %213  ;;  %209 = vadd.xlane.f32.xlu1 %v208_v23 }
 0x62f   :  { %v215_v26 = vsel %vm207_vm4, %v214_v24, %v201_v18 }
 0x630   :  { %v226_v27 = vmul.f32 %v218_v25, %v215_v26 }
 0x632   :  { %227 = vadd.xlane.f32.xlu0 %v226_v27 }
 0x6b7   :  { %v210_v28 = vpop.xlane.xlu1 %209 }
 0x6b8   :  { %v211_v29 = vsel %vm207_vm4, %v210_v28, %v197_v21 }
 0x6b9   :  { %v222_v31 = vmul.f32 %v218_v25, %v211_v29 }
 0x6bb   :  { %v228_v32 = vpop.xlane.xlu0 %227  ;;  %223 = vadd.xlane.f32.xlu1 %v222_v31 }
 0x6bc   :  { %v229_v34 = vsel %vm221_vm5, %v228_v32, %v215_v26 }
 0x6bd   :  { %v240_v35 = vmul.f32 %v232_v33, %v229_v34 }
 0x6bf   :  { %241 = vadd.xlane.f32.xlu0 %v240_v35 }
 0x744   :  { %v224_v36 = vpop.xlane.xlu1 %223 }
 0x745   :  { %v225_v37 = vsel %vm221_vm5, %v224_v36, %v211_v29 }
 0x746   :  { %v236_v39 = vmul.f32 %v232_v33, %v225_v37 }
 0x748   :  { %v242_v40 = vpop.xlane.xlu0 %241  ;;  %237 = vadd.xlane.f32.xlu1 %v236_v39 }
 0x749   :  { %v243_v42 = vsel %vm235_vm6, %v242_v40, %v229_v34 }
 0x74a   :  { %v254_v44 = vmul.f32 %v246_v41, %v243_v42 }
 0x74c   :  { %255 = vadd.xlane.f32.xlu0 %v254_v44 }
 0x7d1   :  { %v238_v46 = vpop.xlane.xlu1 %237 }
 0x7d2   :  { %v239_v47 = vsel %vm235_vm6, %v238_v46, %v225_v37 }
 0x7d3   :  { %v250_v49 = vmul.f32 %v246_v41, %v239_v47 }
 0x7d5   :  { %v256_v50 = vpop.xlane.xlu0 %255  ;;  %251 = vadd.xlane.f32.xlu1 %v250_v49 }
 0x7d6   :  { %v257_v52 = vsel %vm249_vm7, %v256_v50, %v243_v42 }
 0x7d7   :  { %v268_v53 = vmul.f32 %v260_v51, %v257_v52 }
 0x7d9   :  { %269 = vadd.xlane.f32.xlu0 %v268_v53 }
 0x85e   :  { %v252_v54 = vpop.xlane.xlu1 %251 }
 0x85f   :  { %v253_v55 = vsel %vm249_vm7, %v252_v54, %v239_v47 }
 0x860   :  { %v264_v56 = vmul.f32 %v260_v51, %v253_v55 }
 0x862   :  { %v270_v57 = vpop.xlane.xlu0 %269  ;;  %265 = vadd.xlane.f32.xlu1 %v264_v56 }
 0x863   :  { %v271_v58 = vsel %vm263_vm8, %v270_v57, %v257_v52 }
 0x864   :  { %v278_v59 = vmul.f32 %v379_v45, %v271_v58 }
 0x866   :  { %v280_v60 = vsel %vm279_vm9, %v271_v58, %v278_v59 }
 0x867   :  { %316 = vst [vmem:[%s404_s1 + $0x8] sm:$0xff] %v280_v60 }
 0x8eb   :  { %v266_v61 = vpop.xlane.xlu1 %265 }
 0x8ec   :  { %v267_v62 = vsel %vm263_vm8, %v266_v61, %v253_v55 }
 0x8ed   :  { %v273_v63 = vmul.f32 %v359_v7, %v267_v62 }
 0x8ef   :  { %v275_v2 = vsel %vm274_vm10, %v267_v62, %v273_v63 }
 0x8f0   :  { %314 = vst [vmem:[%s404_s1] sm:$0xff] %v275_v2 }

// kernel: custom-call.12
= control target key start
LH: loop header
LB: loop body
LE: loop exit
PB: predicated region body
PF: predicated region fallthrough
CT: control target
= control target key end

     0   :  { %v39_v0 = vlaneseq  ;;  %v333_v10 = vmov -1.0   ;;  %v334_v47 = vmov 0.0   ;;  %s436_s0 = inlined_call_operand.vmem [shape: f32[1,16,16], index: 0, kind: input, shape index: {}]   ;;  %s437_s1 = inlined_call_operand.vmem [shape: f32[1,16,16], index: 1, kind: output, shape index: {}]  }
   0x1   :  { %v34_v3 = vld [vmem:[%s436_s0 + $0x8] sm:$0xff]  ;;  %v32_v36 = vld [vmem:[%s436_s0] sm:$0xff] }
   0x2   :  { %v345_v1 = vand.u32 127, %v39_v0  ;;  %v347_v2 = vshrl.u32 %v39_v0, 7 }
   0x4   :  { %vm41_vm0 = vcmp.lt.s32.totalorder %v345_v1, 16  ;;  %v60_v4 = vadd.s32 8, %v347_v2  ;;  %vm87_vm4 = vcmp.eq.s32.totalorder %v345_v1, 15  ;;  %vm95_vm6 = vcmp.eq.s32.totalorder %v345_v1, 14 }
   0x5   :  { %v88_v11 = vsel %vm87_vm4, 1.0, %v333_v10  ;;  %vm105_vm7 = vcmp.eq.s32.totalorder %v345_v1, 13  ;;  %vm115_vm8 = vcmp.eq.s32.totalorder %v345_v1, 12  ;;  %vm125_vm9 = vcmp.eq.s32.totalorder %v345_v1, 11 }
   0x6   :  { %vm61_vm1 = vcmp.eq.s32.totalorder %v60_v4, %v345_v1  ;;  %vm66_vm2 = vcmp.le.s32.totalorder %v60_v4, %v345_v1  ;;  %vm84_vm5 = vcmp.eq.s32.totalorder %v345_v1, %v60_v4  ;;  %vm45_vm10 = vcmp.eq.s32.totalorder %v347_v2, %v345_v1 }
   0x7   :  { %v63_v5 = vsel %vm61_vm1, %v34_v3, 0.0  ;;  %vm67_vm3 = vmand %vm66_vm2, %vm41_vm0  ;;  %v89_v12 = vsel %vm84_vm5, %v88_v11, 0.0  ;;  %v47_v37 = vsel %vm45_vm10, %v32_v36, 0.0  ;;  %vm135_vm11 = vcmp.eq.s32.totalorder %v345_v1, 10 }
   0x8   :  { %v68_v6 = vsel %vm67_vm3, %v34_v3, 0.0  ;;  %64 = vadd.xlane.f32.xlu0 %v63_v5  ;;  %vm50_vm12 = vcmp.le.s32.totalorder %v347_v2, %v345_v1  ;;  %vm77_vm14 = vcmp.eq.s32.totalorder %v345_v1, %v347_v2  ;;  %vm145_vm15 = vcmp.eq.s32.totalorder %v345_v1, 9 }
   0x9   :  { %vm51_vm13 = vmand %vm50_vm12, %vm41_vm0  ;;  %v78_v48 = vsel %vm77_vm14, -1.0, %v334_v47  ;;  %vm165_vm0 = vcmp.eq.s32.totalorder %v345_v1, 7  ;;  %vm155_vm1 = vcmp.eq.s32.totalorder %v345_v1, 8  ;;  %vm179_vm2 = vcmp.eq.s32.totalorder %v345_v1, 6 }
   0xa   :  { %v52_v44 = vsel %vm51_vm13, %v32_v36, 0.0  ;;  %vm193_vm3 = vcmp.eq.s32.totalorder %v345_v1, 5  ;;  %vm207_vm4 = vcmp.eq.s32.totalorder %v345_v1, 4  ;;  %vm221_vm5 = vcmp.eq.s32.totalorder %v345_v1, 3 }
  0x91   :  { %v358_v7 = vpop.xlane.xlu0 %64 }
  0x92   :  { %329 = vrcp.f32 %v358_v7  ;;  %vm278_vm10 = vweird.f32 %v358_v7 }
  0x9f   :  { %v361_v8 = vpop.eup %329 }
  0xa0   :  { %v70_v9 = vmul.f32 %v361_v8, %v68_v6 }
  0xa2   :  { %71 = vst [vmem:[#allocation2 + $0x8] sm:$0xff] %v70_v9 }
  0xa9   :  { %v91_v13 = vld [vmem:[#allocation2 + $0xe] ss:$0 sm:$0xff]  ;;  %v101_v16 = vld [vmem:[#allocation2 + $0xd] ss:$0 sm:$0xff]  ;;  %v111_v21 = vld [vmem:[#allocation2 + $0xc] ss:$0 sm:$0xff] }
  0xaa   :  { %v92_v14 = vxor.u32 2147483648, %v91_v13  ;;  %v102_v18 = vxor.u32 2147483648, %v101_v16  ;;  %v112_v23 = vxor.u32 2147483648, %v111_v21  ;;  %v121_v26 = vld [vmem:[#allocation2 + $0xb] ss:$0 sm:$0xff] }
  0xab   :  { %v122_v28 = vxor.u32 2147483648, %v121_v26  ;;  %v131_v31 = vld [vmem:[#allocation2 + $0xa] ss:$0 sm:$0xff]  ;;  %v141_v38 = vld [vmem:[#allocation2 + $0x9] ss:$0 sm:$0xff] }
  0xac   :  { %v96_v15 = vmul.f32 %v92_v14, %v89_v12  ;;  %v132_v33 = vxor.u32 2147483648, %v131_v31  ;;  %v142_v40 = vxor.u32 2147483648, %v141_v38  ;;  %v151_v52 = vld [vmem:[#allocation2 + $0x8] ss:$0 sm:$0xff] }
  0xad   :  { %v152_v54 = vxor.u32 2147483648, %v151_v52 }
  0xae   :  { %97 = vadd.xlane.f32.xlu0 %v96_v15 }
 0x137   :  { %v98_v17 = vpop.xlane.xlu0 %97 }
 0x138   :  { %v99_v19 = vsel %vm95_vm6, %v98_v17, %v89_v12  ;;  %vm235_vm6 = vcmp.eq.s32.totalorder %v345_v1, 2 }
 0x139   :  { %v106_v20 = vmul.f32 %v102_v18, %v99_v19 }
 0x13b   :  { %107 = vadd.xlane.f32.xlu1 %v106_v20 }
 0x1c4   :  { %v108_v22 = vpop.xlane.xlu1 %107 }
 0x1c5   :  { %v109_v24 = vsel %vm105_vm7, %v108_v22, %v99_v19  ;;  %vm249_vm7 = vcmp.eq.s32.totalorder %v345_v1, 1 }
 0x1c6   :  { %v116_v25 = vmul.f32 %v112_v23, %v109_v24 }
 0x1c8   :  { %117 = vadd.xlane.f32.xlu1 %v116_v25 }
 0x251   :  { %v118_v27 = vpop.xlane.xlu1 %117 }
 0x252   :  { %v119_v29 = vsel %vm115_vm8, %v118_v27, %v109_v24  ;;  %vm262_vm8 = vcmp.eq.s32.totalorder %v345_v1, 0 }
 0x253   :  { %v126_v30 = vmul.f32 %v122_v28, %v119_v29 }
 0x255   :  { %127 = vadd.xlane.f32.xlu0 %v126_v30 }
 0x2de   :  { %v128_v32 = vpop.xlane.xlu0 %127 }
 0x2df   :  { %v129_v34 = vsel %vm125_vm9, %v128_v32, %v119_v29 }
 0x2e0   :  { %v136_v35 = vmul.f32 %v132_v33, %v129_v34 }
 0x2e2   :  { %137 = vadd.xlane.f32.xlu1 %v136_v35 }
 0x2e6   :  { %48 = vadd.xlane.f32.xlu1 %v47_v37 }
 0x36b   :  { %v138_v39 = vpop.xlane.xlu1 %137 }
 0x36c   :  { %v139_v41 = vsel %vm135_vm11, %v138_v39, %v129_v34 }
 0x36d   :  { %v146_v42 = vmul.f32 %v142_v40, %v139_v41 }
 0x36f   :  { %147 = vadd.xlane.f32.xlu0 %v146_v42  ;;  %v376_v43 = vpop.xlane.xlu1 %48 }
 0x370   :  { %331 = vrcp.f32 %v376_v43  ;;  %vm273_vm9 = vweird.f32 %v376_v43 }
 0x37d   :  { %v383_v45 = vpop.eup %331 }
 0x37e   :  { %v54_v46 = vmul.f32 %v383_v45, %v52_v44 }
 0x380   :  { %55 = vst [vmem:[#allocation2] sm:$0xff] %v54_v46 }
 0x387   :  { %v161_v49 = vld [vmem:[#allocation2 + $0x7] ss:$0 sm:$0xff]  ;;  %v175_v57 = vld [vmem:[#allocation2 + $0x6] ss:$0 sm:$0xff]  ;;  %v189_v2 = vld [vmem:[#allocation2 + $0x5] ss:$0 sm:$0xff] }
 0x388   :  { %v162_v50 = vxor.u32 2147483648, %v161_v49  ;;  %v176_v58 = vxor.u32 2147483648, %v175_v57  ;;  %v190_v4 = vxor.u32 2147483648, %v189_v2  ;;  %v203_v12 = vld [vmem:[#allocation2 + $0x4] ss:$0 sm:$0xff] }
 0x389   :  { %v204_v14 = vxor.u32 2147483648, %v203_v12  ;;  %v217_v20 = vld [vmem:[#allocation2 + $0x3] ss:$0 sm:$0xff]  ;;  %v231_v28 = vld [vmem:[#allocation2 + $0x2] ss:$0 sm:$0xff] }
 0x38a   :  { %v166_v51 = vmul.f32 %v162_v50, %v78_v48  ;;  %v218_v22 = vxor.u32 2147483648, %v217_v20  ;;  %v232_v30 = vxor.u32 2147483648, %v231_v28  ;;  %v245_v36 = vld [vmem:[#allocation2 + $0x1] ss:$0 sm:$0xff]  ;;  %v258_v46 = vld [vmem:[#allocation2] ss:$0 sm:$0xff] }
 0x38b   :  { %v246_v38 = vxor.u32 2147483648, %v245_v36 }
 0x38c   :  { %167 = vadd.xlane.f32.xlu1 %v166_v51 }
 0x3f8   :  { %v148_v53 = vpop.xlane.xlu0 %147 }
 0x3f9   :  { %v149_v55 = vsel %vm145_vm15, %v148_v53, %v139_v41 }
 0x3fa   :  { %v156_v56 = vmul.f32 %v152_v54, %v149_v55 }
 0x3fc   :  { %157 = vadd.xlane.f32.xlu0 %v156_v56 }
 0x415   :  { %v168_v59 = vpop.xlane.xlu1 %167 }
 0x416   :  { %v169_v60 = vsel %vm165_vm0, %v168_v59, %v78_v48  ;;  %v259_v48 = vxor.u32 2147483648, %v258_v46 }
 0x417   :  { %v180_v61 = vmul.f32 %v176_v58, %v169_v60 }
 0x419   :  { %181 = vadd.xlane.f32.xlu1 %v180_v61 }
 0x485   :  { %v158_v62 = vpop.xlane.xlu0 %157 }
 0x486   :  { %v159_v63 = vsel %vm155_vm1, %v158_v62, %v149_v55 }
 0x487   :  { %v170_v0 = vmul.f32 %v162_v50, %v159_v63 }
 0x489   :  { %171 = vadd.xlane.f32.xlu0 %v170_v0 }
 0x4a2   :  { %v182_v3 = vpop.xlane.xlu1 %181 }
 0x4a3   :  { %v183_v5 = vsel %vm179_vm2, %v182_v3, %v169_v60 }
 0x4a4   :  { %v194_v6 = vmul.f32 %v190_v4, %v183_v5 }
 0x4a6   :  { %195 = vadd.xlane.f32.xlu1 %v194_v6 }
 0x512   :  { %v172_v9 = vpop.xlane.xlu0 %171 }
 0x513   :  { %v173_v10 = vsel %vm165_vm0, %v172_v9, %v159_v63 }
 0x514   :  { %v184_v11 = vmul.f32 %v176_v58, %v173_v10 }
 0x516   :  { %185 = vadd.xlane.f32.xlu0 %v184_v11 }
 0x52f   :  { %v196_v13 = vpop.xlane.xlu1 %195 }
 0x530   :  { %v197_v15 = vsel %vm193_vm3, %v196_v13, %v183_v5 }
 0x531   :  { %v208_v16 = vmul.f32 %v204_v14, %v197_v15 }
 0x533   :  { %209 = vadd.xlane.f32.xlu1 %v208_v16 }
 0x59f   :  { %v186_v17 = vpop.xlane.xlu0 %185 }
 0x5a0   :  { %v187_v18 = vsel %vm179_vm2, %v186_v17, %v173_v10 }
 0x5a1   :  { %v198_v19 = vmul.f32 %v190_v4, %v187_v18 }
 0x5a3   :  { %199 = vadd.xlane.f32.xlu0 %v198_v19 }
 0x5bc   :  { %v210_v21 = vpop.xlane.xlu1 %209 }
 0x5bd   :  { %v211_v23 = vsel %vm207_vm4, %v210_v21, %v197_v15 }
 0x5be   :  { %v222_v24 = vmul.f32 %v218_v22, %v211_v23 }
 0x5c0   :  { %223 = vadd.xlane.f32.xlu1 %v222_v24 }
 0x62c   :  { %v200_v25 = vpop.xlane.xlu0 %199 }
 0x62d   :  { %v201_v26 = vsel %vm193_vm3, %v200_v25, %v187_v18 }
 0x62e   :  { %v212_v27 = vmul.f32 %v204_v14, %v201_v26 }
 0x630   :  { %213 = vadd.xlane.f32.xlu0 %v212_v27 }
 0x649   :  { %v224_v29 = vpop.xlane.xlu1 %223 }
 0x64a   :  { %v225_v31 = vsel %vm221_vm5, %v224_v29, %v211_v23 }
 0x64b   :  { %v236_v32 = vmul.f32 %v232_v30, %v225_v31 }
 0x64d   :  { %237 = vadd.xlane.f32.xlu1 %v236_v32 }
 0x6b9   :  { %v214_v33 = vpop.xlane.xlu0 %213 }
 0x6ba   :  { %v215_v34 = vsel %vm207_vm4, %v214_v33, %v201_v26 }
 0x6bb   :  { %v226_v35 = vmul.f32 %v218_v22, %v215_v34 }
 0x6bd   :  { %227 = vadd.xlane.f32.xlu0 %v226_v35 }
 0x6d6   :  { %v238_v37 = vpop.xlane.xlu1 %237 }
 0x6d7   :  { %v239_v39 = vsel %vm235_vm6, %v238_v37, %v225_v31 }
 0x6d8   :  { %v250_v40 = vmul.f32 %v246_v38, %v239_v39 }
 0x6da   :  { %251 = vadd.xlane.f32.xlu1 %v250_v40 }
 0x746   :  { %v228_v41 = vpop.xlane.xlu0 %227 }
 0x747   :  { %v229_v42 = vsel %vm221_vm5, %v228_v41, %v215_v34 }
 0x748   :  { %v240_v44 = vmul.f32 %v232_v30, %v229_v42 }
 0x74a   :  { %241 = vadd.xlane.f32.xlu0 %v240_v44 }
 0x763   :  { %v252_v47 = vpop.xlane.xlu1 %251 }
 0x764   :  { %v253_v49 = vsel %vm249_vm7, %v252_v47, %v239_v39 }
 0x765   :  { %v263_v50 = vmul.f32 %v259_v48, %v253_v49 }
 0x767   :  { %264 = vadd.xlane.f32.xlu1 %v263_v50 }
 0x7d3   :  { %v242_v51 = vpop.xlane.xlu0 %241 }
 0x7d4   :  { %v243_v52 = vsel %vm235_vm6, %v242_v51, %v229_v42 }
 0x7d5   :  { %v254_v53 = vmul.f32 %v246_v38, %v243_v52 }
 0x7d7   :  { %255 = vadd.xlane.f32.xlu0 %v254_v53 }
 0x7f0   :  { %v265_v54 = vpop.xlane.xlu1 %264 }
 0x7f1   :  { %v266_v55 = vsel %vm262_vm8, %v265_v54, %v253_v49 }
 0x7f2   :  { %v272_v56 = vmul.f32 %v383_v45, %v266_v55 }
 0x7f4   :  { %v274_v57 = vsel %vm273_vm9, %v266_v55, %v272_v56 }
 0x7f5   :  { %313 = vst [vmem:[%s437_s1] sm:$0xff] %v274_v57 }
 0x860   :  { %v256_v58 = vpop.xlane.xlu0 %255 }
 0x861   :  { %v257_v59 = vsel %vm249_vm7, %v256_v58, %v243_v52 }
 0x862   :  { %v267_v60 = vmul.f32 %v259_v48, %v257_v59 }
 0x864   :  { %268 = vadd.xlane.f32.xlu0 %v267_v60 }
 0x8ed   :  { %v269_v61 = vpop.xlane.xlu0 %268 }
 0x8ee   :  { %v270_v62 = vsel %vm262_vm8, %v269_v61, %v257_v59 }
 0x8ef   :  { %v277_v63 = vmul.f32 %v361_v8, %v270_v62 }
 0x8f1   :  { %v279_v45 = vsel %vm278_vm10, %v270_v62, %v277_v63 }
 0x8f2   :  { %315 = vst [vmem:[%s437_s1 + $0x8] sm:$0xff] %v279_v45 }

// kernel: modeler_forward.2
= control target key start
LH: loop header
LB: loop body
LE: loop exit
PB: predicated region body
PF: predicated region fallthrough
CT: control target
= control target key end

     0   :  { %vm62_vm0 = vcmask 261120   ;;  %vm155_vm1 = vcmask 523264   ;;  %vm404_vm2 = vcmask 130048   ;;  %s1158_s3 = inlined_call_operand.vmem [shape: f32[32,32], index: 3, kind: input, shape index: {}]   ;;  %s1159_s1 = inlined_call_operand.vmem [shape: f32[64,32], index: 1, kind: input, shape index: {}]   ;;  %s1160_s0 = inlined_call_operand.vmem [shape: f32[64,64], index: 0, kind: input, shape index: {}]   ;;  %s1161_s5 = inlined_call_operand.vmem [shape: f32[32,16], index: 5, kind: input, shape index: {}]   ;;  %s1162_s7 = inlined_call_operand.vmem [shape: f32[32,16], index: 7, kind: input, shape index: {}]   ;;  %s1163_s4 = inlined_call_operand.vmem [shape: f32[1,32], index: 4, kind: input, shape index: {}]   ;;  %s1164_s2 = inlined_call_operand.vmem [shape: f32[64,32], index: 2, kind: input, shape index: {}]   ;;  %s1165_s8 = inlined_call_operand.vmem [shape: f32[1,16], index: 8, kind: input, shape index: {}]   ;;  %s1166_s10 = inlined_call_operand.vmem [shape: f32[64,16], index: 10, kind: output, shape index: {1}]   ;;  %s1167_s6 = inlined_call_operand.vmem [shape: f32[1,16], index: 6, kind: input, shape index: {}]   ;;  %s1168_s9 = inlined_call_operand.vmem [shape: f32[64,16], index: 9, kind: output, shape index: {0}]   ;;  %s1169_s11 = inlined_call_operand.vmem [shape: f32[16,16], index: 11, kind: output, shape index: {2}]  }
   0x1   :  { %v54_v0 = vld [vmem:[%s1158_s3 + $0x10] sm:$0xff]  ;;  %v55_v1 = vld [vmem:[%s1158_s3 + $0x18] sm:$0xff]  ;;  %v52_v2 = vld [vmem:[%s1158_s3] sm:$0xff] }
   0x2   :  { %v61_v3 = vpack.c.bf16 %v55_v1, %v54_v0  ;;  %v53_v4 = vld [vmem:[%s1158_s3 + $0x8] sm:$0xff]  ;;  %v44_v5 = vld [vmem:[%s1159_s1] sm:$0xff]  ;;  %v46_v9 = vld [vmem:[%s1159_s1 + $0x10] sm:$0xff] }
   0x3   :  { %v45_v6 = vld [vmem:[%s1159_s1 + $0x8] sm:$0xff]  ;;  %v60_v7 = vpack.c.bf16 %v53_v4, %v52_v2  ;;  %v47_v10 = vld [vmem:[%s1159_s1 + $0x18] sm:$0xff]  ;;  %v48_v11 = vld [vmem:[%s1159_s1 + $0x20] sm:$0xff] }
   0x4   :  { %v56_v8 = vpack.c.bf16 %v45_v6, %v44_v5  ;;  %775 = vmatprep.subr.bf16.mxu0 %v61_v3  ;;  %v49_v12 = vld [vmem:[%s1159_s1 + $0x28] sm:$0xff]  ;;  %v57_v13 = vpack.c.bf16 %v47_v10, %v46_v9  ;;  %v50_v15 = vld [vmem:[%s1159_s1 + $0x30] sm:$0xff]  ;;  %v51_v16 = vld [vmem:[%s1159_s1 + $0x38] sm:$0xff] }
   0x5   :  { %776 = vmatpush3.bf16.msra.mxu0 %v61_v3  ;;  %v58_v14 = vpack.c.bf16 %v49_v12, %v48_v11  ;;  %v59_v17 = vpack.c.bf16 %v51_v16, %v50_v15  ;;  %v36_v18 = vld [vmem:[%s1160_s0] sm:$0xff]  ;;  %v37_v19 = vld [vmem:[%s1160_s0 + $0x8] sm:$0xff]  ;;  %v243_v21 = vld [vmem:[%s1161_s5 + $0x10] sm:$0xff] }
   0x6   :  { %779 = vmatprep.mubr.msk.bf16.mxu0 %vm62_vm0, %v56_v8  ;;  %777 = vmatprep.subr.bf16.mxu0 %v60_v7  ;;  %v140_v20 = vpack.c.bf16 %v37_v19, %v36_v18  ;;  %v244_v22 = vld [vmem:[%s1161_s5 + $0x18] sm:$0xff]  ;;  %v38_v36 = vld [vmem:[%s1160_s0 + $0x10] sm:$0xff]  ;;  %v40_v38 = vld [vmem:[%s1160_s0 + $0x20] sm:$0xff] }
   0x7   :  { %v250_v23 = vpack.c.bf16 %v244_v22, %v243_v21  ;;  %v39_v37 = vld [vmem:[%s1160_s0 + $0x18] sm:$0xff]  ;;  %v41_v39 = vld [vmem:[%s1160_s0 + $0x28] sm:$0xff]  ;;  %v42_v42 = vld [vmem:[%s1160_s0 + $0x30] sm:$0xff] }
   0x8   :  { %795 = vmatprep.mubr.msk.bf16.mxu1 %vm155_vm1, %v140_v20  ;;  %v996_v40 = vpack.c.bf16 %v39_v37, %v38_v36  ;;  %v998_v41 = vpack.c.bf16 %v41_v39, %v40_v38  ;;  %v43_v43 = vld [vmem:[%s1160_s0 + $0x38] sm:$0xff]  ;;  %v241_v45 = vld [vmem:[%s1161_s5] sm:$0xff]  ;;  %v242_v46 = vld [vmem:[%s1161_s5 + $0x8] sm:$0xff] }
   0x9   :  { %778 = vmatpush3.bf16.msra.mxu0 %v60_v7  ;;  %v1010_v44 = vpack.c.bf16 %v43_v43, %v42_v42  ;;  %v249_v47 = vpack.c.bf16 %v242_v46, %v241_v45  ;;  %v424_v48 = vld [vmem:[%s1162_s7 + $0x18] sm:$0xff]  ;;  %v700_v51 = vld [vmem:[%s1163_s4] ss:$0 sm:$0xff]  ;;  %v423_v5 = vld [vmem:[%s1162_s7 + $0x10] sm:$0xff] }
   0xa   :  { %803 = vmatprep.subr.bf16.mxu0 %v250_v23  ;;  %v422_v9 = vld [vmem:[%s1162_s7 + $0x8] sm:$0xff]  ;;  %v415_v19 = vld [vmem:[%s1164_s2 + $0x10] sm:$0xff]  ;;  %v417_v21 = vld [vmem:[%s1164_s2 + $0x20] sm:$0xff] }
   0xb   :  { %v414_v18 = vld [vmem:[%s1164_s2 + $0x8] sm:$0xff] }
   0xc   :  { %780 = vmatmul.mubr.msk.bf16.vlgmr.msra.gmra.mxu0 %vm62_vm0, %v57_v13  ;;  %v421_v13 = vld [vmem:[%s1162_s7] sm:$0xff]  ;;  %v418_v22 = vld [vmem:[%s1164_s2 + $0x28] sm:$0xff] }
   0xd   :  { %783 = vmatprep.mubr.msk.bf16.mxu0 %vm62_vm0, %v58_v14  ;;  %804 = vmatpush3.bf16.msra.mxu0 %v250_v23  ;;  %v419_v23 = vld [vmem:[%s1164_s2 + $0x30] sm:$0xff] }
   0xe   :  { %805 = vmatprep.subr.bf16.mxu0 %v249_v47 }
  0x11   :  { %806 = vmatpush3.bf16.msra.mxu0 %v249_v47 }
  0x12   :  { %831 = vmatprep.subr.mxu0 %v424_v48 }
  0x14   :  { %784 = vmatmul.mubr.msk.bf16.gmra.mxu0 %vm62_vm0, %v59_v17  ;;  %v413_v17 = vld [vmem:[%s1164_s2] sm:$0xff] }
  0xcc   :  { %v781_v24 = vpop.f32.mrf.mxu0 }
  0xce   :  { %v109_v25 = vpop.f32.mrf.mxu0 }
  0xd0   :  { %v782_v26 = vpop.f32.mrf.mxu0 }
  0xd1   :  { %v145_v34 = vpack.c.bf16 %v782_v26, %v781_v24  ;;  %v420_v24 = vld [vmem:[%s1164_s2 + $0x38] sm:$0xff] }
  0xd2   :  { %v112_v27 = vpop.f32.mrf.mxu0 }
  0xd3   :  { %v144_v35 = vpack.c.bf16 %v112_v27, %v109_v25 }
  0xd4   :  { %v785_v28 = vpop.f32.mrf.mxu0 }
  0xd6   :  { %v125_v29 = vpop.f32.mrf.mxu0 }
  0xd8   :  { %v786_v30 = vpop.f32.mrf.mxu0 }
  0xd9   :  { %v147_v31 = vpack.c.bf16 %v786_v30, %v785_v28 }
  0xda   :  { %v128_v32 = vpop.f32.mrf.mxu0 }
  0xdb   :  { %v146_v33 = vpack.c.bf16 %v128_v32, %v125_v29  ;;  %787 = vmatprep.subr.bf16.mxu1 %v147_v31 }
  0xdc   :  { %788 = vmatpush3.bf16.msra.mxu1 %v147_v31 }
  0xdd   :  { %789 = vmatprep.subr.bf16.mxu1 %v146_v33 }
  0xe0   :  { %790 = vmatpush3.bf16.msra.mxu1 %v146_v33 }
  0xe1   :  { %791 = vmatprep.subr.bf16.mxu1 %v145_v34 }
  0xe4   :  { %792 = vmatpush3.bf16.msra.mxu1 %v145_v34  ;;  %v714_v34 = vld [vmem:[%s1165_s8] ss:$0 sm:$0xff] }
  0xe5   :  { %793 = vmatprep.subr.bf16.mxu1 %v144_v35 }
  0xe8   :  { %794 = vmatpush3.bf16.msra.mxu1 %v144_v35 }
  0xeb   :  { %796 = vmatmul.mubr.msk.bf16.vlgmr.msra.gmra.mxu1 %vm155_vm1, %v996_v40 }
  0xec   :  { %799 = vmatprep.mubr.msk.bf16.mxu1 %vm155_vm1, %v998_v41 }
  0xf3   :  { %800 = vmatmul.mubr.msk.bf16.gmra.mxu1 %vm155_vm1, %v1010_v44 }
  0xf4   :  { %823 = vmatprep.mubr.msk.bf16.mxu1 %vm155_vm1, %v140_v20  ;;  %v416_v20 = vld [vmem:[%s1164_s2 + $0x18] sm:$0xff] }
 0x1ab   :  { %v797_v49 = vpop.f32.mrf.mxu1 }
 0x1ac   :  { %v211_v55 = vadd.f32 %v797_v49, %v700_v51 }
 0x1ad   :  { %v202_v50 = vpop.f32.mrf.mxu1 }
 0x1ae   :  { %v203_v53 = vadd.f32 %v700_v51, %v202_v50  ;;  %v235_v62 = vmax.f32 %v211_v55, 0.0 }
 0x1af   :  { %v798_v52 = vpop.f32.mrf.mxu1 }
 0x1b0   :  { %v214_v54 = vadd.f32 %v798_v52, %v700_v51  ;;  %v233_v60 = vmax.f32 %v203_v53, 0.0 }
 0x1b1   :  { %v205_v56 = vpop.f32.mrf.mxu1 }
 0x1b2   :  { %v206_v57 = vadd.f32 %v700_v51, %v205_v56  ;;  %v236_v58 = vmax.f32 %v214_v54, 0.0 }
 0x1b3   :  { %v801_v59 = vpop.f32.mrf.mxu1 }
 0x1b4   :  { %v234_v61 = vmax.f32 %v206_v57, 0.0  ;;  %v246_v1 = vpack.c.bf16 %v236_v58, %v235_v62  ;;  %v227_v6 = vadd.f32 %v801_v59, %v700_v51 }
 0x1b5   :  { %v218_v63 = vpop.f32.mrf.mxu1 }
 0x1b6   :  { %v245_v0 = vpack.c.bf16 %v234_v61, %v233_v60  ;;  %v219_v3 = vadd.f32 %v700_v51, %v218_v63  ;;  %v239_v14 = vmax.f32 %v227_v6, 0.0 }
 0x1b7   :  { %v802_v2 = vpop.f32.mrf.mxu1 }
 0x1b8   :  { %v230_v4 = vadd.f32 %v802_v2, %v700_v51  ;;  %807 = vmatprep.mubr.msk.bf16.mxu0 %vm62_vm0, %v245_v0  ;;  %v237_v11 = vmax.f32 %v219_v3, 0.0 }
 0x1b9   :  { %v221_v7 = vpop.f32.mrf.mxu1  ;;  %808 = vmatmul.mubr.msk.bf16.vlgmr.msra.gmra.mxu0 %vm62_vm0, %v246_v1 }
 0x1ba   :  { %v222_v8 = vadd.f32 %v700_v51, %v221_v7  ;;  %832 = vmatpush3.msra.mxu0 %v424_v48  ;;  %v240_v10 = vmax.f32 %v230_v4, 0.0 }
 0x1bb   :  { %833 = vmatprep.subr.mxu0 %v423_v5 }
 0x1bc   :  { %v238_v12 = vmax.f32 %v222_v8, 0.0  ;;  %834 = vmatpush3.msra.mxu0 %v423_v5  ;;  %v248_v16 = vpack.c.bf16 %v240_v10, %v239_v14 }
 0x1bd   :  { %835 = vmatprep.subr.mxu0 %v422_v9 }
 0x1be   :  { %v247_v15 = vpack.c.bf16 %v238_v12, %v237_v11  ;;  %836 = vmatpush3.msra.mxu0 %v422_v9 }
 0x1bf   :  { %837 = vmatprep.subr.mxu0 %v421_v13 }
 0x1c0   :  { %811 = vmatprep.mubr.msk.bf16.mxu0 %vm62_vm0, %v247_v15  ;;  %838 = vmatpush3.msra.mxu0 %v421_v13 }
 0x1c1   :  { %812 = vmatmul.mubr.msk.bf16.gmra.mxu0 %vm62_vm0, %v248_v16 }
 0x1c2   :  { %839 = vmatprep.mubr.msk.f32.mxu0 %vm62_vm0, %v413_v17 }
 0x1c9   :  { %840 = vmatmul.mubr.msk.f32.vlgmr.msra.gmra.mxu0 %vm62_vm0, %v414_v18 }
 0x1ca   :  { %842 = vmatprep.mubr.msk.f32.mxu0 %vm62_vm0, %v415_v19 }
 0x1cd   :  { %843 = vmatmul.mubr.msk.f32.gmra.mxu0 %vm62_vm0, %v416_v20 }
 0x1ce   :  { %845 = vmatprep.mubr.msk.f32.mxu0 %vm62_vm0, %v417_v21 }
 0x1d1   :  { %846 = vmatmul.mubr.msk.f32.gmra.mxu0 %vm62_vm0, %v418_v22 }
 0x1d2   :  { %848 = vmatprep.mubr.msk.f32.mxu0 %vm62_vm0, %v419_v23 }
 0x1d5   :  { %849 = vmatmul.mubr.msk.f32.gmra.mxu0 %vm62_vm0, %v420_v24 }
 0x279   :  { %v809_v25 = vpop.f32.mrf.mxu0 }
 0x27b   :  { %v297_v26 = vpop.f32.mrf.mxu0 }
 0x27d   :  { %v810_v27 = vpop.f32.mrf.mxu0 }
 0x27e   :  { %v329_v39 = vpack.c.bf16 %v810_v27, %v809_v25 }
 0x27f   :  { %v300_v28 = vpop.f32.mrf.mxu0 }
 0x280   :  { %v328_v47 = vpack.c.bf16 %v300_v28, %v297_v26 }
 0x281   :  { %v813_v29 = vpop.f32.mrf.mxu0 }
 0x283   :  { %v313_v30 = vpop.f32.mrf.mxu0 }
 0x285   :  { %v814_v31 = vpop.f32.mrf.mxu0 }
 0x286   :  { %v331_v32 = vpack.c.bf16 %v814_v31, %v813_v29 }
 0x287   :  { %v316_v33 = vpop.f32.mrf.mxu0 }
 0x288   :  { %v330_v35 = vpack.c.bf16 %v316_v33, %v313_v30  ;;  %815 = vmatprep.subr.bf16.mxu1 %v331_v32 }
 0x289   :  { %816 = vmatpush3.bf16.msra.mxu1 %v331_v32  ;;  %v841_v36 = vpop.f32.mrf.mxu0 }
 0x28a   :  { %v528_v37 = vadd.f32 %v841_v36, %v714_v34  ;;  %817 = vmatprep.subr.bf16.mxu1 %v330_v35 }
 0x28b   :  { %v522_v38 = vpop.f32.mrf.mxu0 }
 0x28c   :  { %562 = vst.msk [vmem:[%s1166_s10 + $0x8] sm:$0xff] %vm404_vm2, %v528_v37  ;;  %v523_v42 = vadd.f32 %v714_v34, %v522_v38 }
 0x28d   :  { %818 = vmatpush3.bf16.msra.mxu1 %v330_v35  ;;  %v844_v43 = vpop.f32.mrf.mxu0 }
 0x28e   :  { %561 = vst.msk [vmem:[%s1166_s10] sm:$0xff] %vm404_vm2, %v523_v42  ;;  %v538_v45 = vadd.f32 %v844_v43, %v714_v34  ;;  %569 = vxpose.xlu0.b32.start [1/8] (short) (narrow) %v523_v42, 16  ;;  %819 = vmatprep.subr.bf16.mxu1 %v329_v39 }
 0x28f   :  { %v532_v46 = vpop.f32.mrf.mxu0 }
 0x290   :  { %564 = vst.msk [vmem:[%s1166_s10 + $0x18] sm:$0xff] %vm404_vm2, %v538_v45  ;;  %v533_v48 = vadd.f32 %v714_v34, %v532_v46 }
 0x291   :  { %820 = vmatpush3.bf16.msra.mxu1 %v329_v39  ;;  %v847_v49 = vpop.f32.mrf.mxu0 }
 0x292   :  { %563 = vst.msk [vmem:[%s1166_s10 + $0x10] sm:$0xff] %vm404_vm2, %v533_v48  ;;  %v548_v50 = vadd.f32 %v847_v49, %v714_v34  ;;  %570 = vxpose.xlu0.b32.cont [2/8] (short) (narrow) %v528_v37, 16  ;;  %821 = vmatprep.subr.bf16.mxu1 %v328_v47 }
 0x293   :  { %v542_v51 = vpop.f32.mrf.mxu0 }
 0x294   :  { %566 = vst.msk [vmem:[%s1166_s10 + $0x28] sm:$0xff] %vm404_vm2, %v548_v50  ;;  %v543_v52 = vadd.f32 %v714_v34, %v542_v51 }
 0x295   :  { %822 = vmatpush3.bf16.msra.mxu1 %v328_v47  ;;  %v850_v53 = vpop.f32.mrf.mxu0 }
 0x296   :  { %565 = vst.msk [vmem:[%s1166_s10 + $0x20] sm:$0xff] %vm404_vm2, %v543_v52  ;;  %v558_v54 = vadd.f32 %v850_v53, %v714_v34  ;;  %571 = vxpose.xlu0.b32.cont [3/8] (short) (narrow) %v533_v48, 16 }
 0x297   :  { %v552_v55 = vpop.f32.mrf.mxu0 }
 0x298   :  { %568 = vst.msk [vmem:[%s1166_s10 + $0x38] sm:$0xff] %vm404_vm2, %v558_v54  ;;  %v553_v56 = vadd.f32 %v714_v34, %v552_v55  ;;  %851 = vmatprep.subr.mxu1 %v558_v54  ;;  %824 = vmatmul.mubr.msk.bf16.vlgmr.msra.gmra.mxu1 %vm155_vm1, %v996_v40 }
 0x299   :  { %852 = vmatpush3.msra.mxu1 %v558_v54  ;;  %827 = vmatprep.mubr.msk.bf16.mxu1 %vm155_vm1, %v998_v41 }
 0x29a   :  { %567 = vst.msk [vmem:[%s1166_s10 + $0x30] sm:$0xff] %vm404_vm2, %v553_v56  ;;  %572 = vxpose.xlu0.b32.cont [4/8] (short) (narrow) %v538_v45, 16  ;;  %853 = vmatprep.subr.mxu1 %v553_v56 }
 0x29b   :  { %854 = vmatpush3.msra.mxu1 %v553_v56 }
 0x29c   :  { %855 = vmatprep.subr.mxu1 %v548_v50 }
 0x29d   :  { %856 = vmatpush3.msra.mxu1 %v548_v50 }
 0x29e   :  { %573 = vxpose.xlu0.b32.cont [5/8] (short) (narrow) %v543_v52, 16  ;;  %857 = vmatprep.subr.mxu1 %v543_v52 }
 0x29f   :  { %858 = vmatpush3.msra.mxu1 %v543_v52 }
 0x2a0   :  { %859 = vmatprep.subr.mxu1 %v538_v45  ;;  %828 = vmatmul.mubr.msk.bf16.gmra.mxu1 %vm155_vm1, %v1010_v44  ;;  %v709_v44 = vld [vmem:[%s1167_s6] ss:$0 sm:$0xff] }
 0x2a1   :  { %860 = vmatpush3.msra.mxu1 %v538_v45 }
 0x2a2   :  { %574 = vxpose.xlu0.b32.cont [6/8] (short) (narrow) %v548_v50, 16  ;;  %861 = vmatprep.subr.mxu1 %v533_v48 }
 0x2a3   :  { %862 = vmatpush3.msra.mxu1 %v533_v48 }
 0x2a4   :  { %863 = vmatprep.subr.mxu1 %v528_v37 }
 0x2a5   :  { %864 = vmatpush3.msra.mxu1 %v528_v37 }
 0x2a6   :  { %575 = vxpose.xlu0.b32.cont [7/8] (short) (narrow) %v553_v56, 16  ;;  %865 = vmatprep.subr.mxu1 %v523_v42 }
 0x2a7   :  { %866 = vmatpush3.msra.mxu1 %v523_v42 }
 0x2aa   :  { %576 = vxpose.xlu0.b32.end [8/8] (short) (narrow) %v558_v54, 16 }
 0x30a   :  { %v585_v40 = vpop.trf.xlu0 }
 0x30b   :  { %867 = vmatprep.mubr.msk.f32.mxu1 %vm155_vm1, %v585_v40 }
 0x30e   :  { %v586_v41 = vpop.trf.xlu0 }
 0x30f   :  { %868 = vmatmul.mubr.msk.f32.vlgmr.msra.gmra.mxu1 %vm155_vm1, %v586_v41 }
 0x358   :  { %v825_v57 = vpop.f32.mrf.mxu1 }
 0x359   :  { %v382_v58 = vadd.f32 %v825_v57, %v709_v44 }
 0x35a   :  { %v373_v59 = vpop.f32.mrf.mxu1 }
 0x35b   :  { %407 = vst.msk [vmem:[%s1168_s9 + $0x10] sm:$0xff] %vm404_vm2, %v382_v58  ;;  %v374_v60 = vadd.f32 %v709_v44, %v373_v59 }
 0x35c   :  { %v826_v61 = vpop.f32.mrf.mxu1 }
 0x35d   :  { %405 = vst.msk [vmem:[%s1168_s9] sm:$0xff] %vm404_vm2, %v374_v60  ;;  %v385_v62 = vadd.f32 %v826_v61, %v709_v44 }
 0x35e   :  { %v376_v63 = vpop.f32.mrf.mxu1 }
 0x35f   :  { %408 = vst.msk [vmem:[%s1168_s9 + $0x18] sm:$0xff] %vm404_vm2, %v385_v62  ;;  %v377_v0 = vadd.f32 %v709_v44, %v376_v63 }
 0x360   :  { %v829_v1 = vpop.f32.mrf.mxu1 }
 0x361   :  { %406 = vst.msk [vmem:[%s1168_s9 + $0x8] sm:$0xff] %vm404_vm2, %v377_v0  ;;  %v398_v2 = vadd.f32 %v829_v1, %v709_v44 }
 0x362   :  { %v389_v3 = vpop.f32.mrf.mxu1 }
 0x363   :  { %411 = vst.msk [vmem:[%s1168_s9 + $0x30] sm:$0xff] %vm404_vm2, %v398_v2  ;;  %v390_v4 = vadd.f32 %v709_v44, %v389_v3 }
 0x364   :  { %v830_v5 = vpop.f32.mrf.mxu1 }
 0x365   :  { %409 = vst.msk [vmem:[%s1168_s9 + $0x20] sm:$0xff] %vm404_vm2, %v390_v4  ;;  %v401_v6 = vadd.f32 %v830_v5, %v709_v44 }
 0x366   :  { %v392_v7 = vpop.f32.mrf.mxu1 }
 0x367   :  { %412 = vst.msk [vmem:[%s1168_s9 + $0x38] sm:$0xff] %vm404_vm2, %v401_v6  ;;  %v393_v8 = vadd.f32 %v709_v44, %v392_v7 }
 0x369   :  { %410 = vst.msk [vmem:[%s1168_s9 + $0x28] sm:$0xff] %vm404_vm2, %v393_v8 }
 0x3cf   :  { %v869_v9 = vpop.f32.mrf.mxu1 }
 0x3d0   :  { %683 = vst.msk [vmem:[%s1169_s11 + $0x8] sm:$0xff] %vm404_vm2, %v869_v9 }
 0x3d1   :  { %v673_v10 = vpop.f32.mrf.mxu1 }
 0x3d2   :  { %682 = vst.msk [vmem:[%s1169_s11] sm:$0xff] %vm404_vm2, %v673_v10 }

// kernel: modeler_forward.3
= control target key start
LH: loop header
LB: loop body
LE: loop exit
PB: predicated region body
PF: predicated region fallthrough
CT: control target
= control target key end

     0   :  { %vm29_vm0 = vcmask 130048   ;;  %vm280_vm1 = vcmask 523264   ;;  %s990_s1 = inlined_call_operand.vmem [shape: f32[16,16], index: 1, kind: input, shape index: {}]   ;;  %s991_s2 = inlined_call_operand.vmem [shape: f32[16,16], index: 2, kind: input, shape index: {}]   ;;  %s992_s0 = inlined_call_operand.vmem [shape: f32[64,16], index: 0, kind: input, shape index: {}]   ;;  %s993_s3 = inlined_call_operand.vmem [shape: f32[64,64], index: 3, kind: input, shape index: {}]   ;;  %s994_s4 = inlined_call_operand.vmem [shape: f32[64,16], index: 4, kind: output, shape index: {}]  }
   0x1   :  { %v28_v0 = vld [vmem:[%s990_s1 + $0x8] sm:$0xff]  ;;  %v27_v1 = vld [vmem:[%s990_s1] sm:$0xff]  ;;  %v853_v6 = vld [vmem:[%s992_s0 + $0x10] sm:$0xff] }
   0x2   :  { %v25_v2 = vld [vmem:[%s991_s2] sm:$0xff]  ;;  %710 = vmatprep.subr.mxu0 %v28_v0  ;;  %v26_v3 = vld [vmem:[%s991_s2 + $0x8] sm:$0xff]  ;;  %v859_v7 = vld [vmem:[%s992_s0 + $0x18] sm:$0xff] }
   0x3   :  { %714 = vmatprep.mubr.msk.f32.mxu0 %vm29_vm0, %v25_v2  ;;  %711 = vmatpush3.msra.mxu0 %v28_v0  ;;  %v839_v4 = vld [vmem:[%s992_s0] sm:$0xff]  ;;  %v847_v5 = vld [vmem:[%s992_s0 + $0x8] sm:$0xff]  ;;  %v877_v10 = vld [vmem:[%s992_s0 + $0x30] sm:$0xff] }
   0x4   :  { %712 = vmatprep.subr.mxu0 %v27_v1  ;;  %721 = vmatprep.mubr.msk.f32.mxu1 %vm29_vm0, %v839_v4  ;;  %v865_v8 = vld [vmem:[%s992_s0 + $0x20] sm:$0xff]  ;;  %v871_v9 = vld [vmem:[%s992_s0 + $0x28] sm:$0xff]  ;;  %v883_v11 = vld [vmem:[%s992_s0 + $0x38] sm:$0xff] }
   0x5   :  { %713 = vmatpush3.msra.mxu0 %v27_v1  ;;  %248 = vxpose.xlu0.b32.start [1/8] (short) (narrow) %v839_v4, 16  ;;  %v467_v32 = vld [vmem:[%s993_s3] sm:$0xff]  ;;  %v468_v33 = vld [vmem:[%s993_s3 + $0x8] sm:$0xff]  ;;  %v469_v34 = vld [vmem:[%s993_s3 + $0x10] sm:$0xff] }
   0x6   :  { %715 = vmatmul.mubr.msk.f32.vlgmr.msra.gmra.mxu0 %vm29_vm0, %v26_v3  ;;  %v470_v35 = vld [vmem:[%s993_s3 + $0x18] sm:$0xff]  ;;  %v471_v36 = vld [vmem:[%s993_s3 + $0x20] sm:$0xff]  ;;  %v472_v37 = vld [vmem:[%s993_s3 + $0x28] sm:$0xff] }
   0x7   :  { %784 = vmatprep.mubr.msk.f32.mxu0 %vm280_vm1, %v467_v32  ;;  %v473_v38 = vld [vmem:[%s993_s3 + $0x30] sm:$0xff]  ;;  %v474_v39 = vld [vmem:[%s993_s3 + $0x38] sm:$0xff] }
   0x9   :  { %249 = vxpose.xlu0.b32.cont [2/8] (short) (narrow) %v847_v5, 16 }
   0xd   :  { %250 = vxpose.xlu0.b32.cont [3/8] (short) (narrow) %v853_v6, 16 }
  0x11   :  { %251 = vxpose.xlu0.b32.cont [4/8] (short) (narrow) %v859_v7, 16 }
  0x15   :  { %252 = vxpose.xlu0.b32.cont [5/8] (short) (narrow) %v865_v8, 16 }
  0x19   :  { %253 = vxpose.xlu0.b32.cont [6/8] (short) (narrow) %v871_v9, 16 }
  0x1d   :  { %254 = vxpose.xlu0.b32.cont [7/8] (short) (narrow) %v877_v10, 16 }
  0x21   :  { %255 = vxpose.xlu0.b32.end [8/8] (short) (narrow) %v883_v11, 16 }
  0x81   :  { %v264_v14 = vpop.trf.xlu0 }
  0x85   :  { %v265_v31 = vpop.trf.xlu0 }
  0xc6   :  { %v716_v12 = vpop.f32.mrf.mxu0 }
  0xc7   :  { %717 = vmatprep.subr.mxu1 %v716_v12 }
  0xc8   :  { %v102_v13 = vpop.f32.mrf.mxu0  ;;  %718 = vmatpush3.msra.mxu1 %v716_v12 }
  0xc9   :  { %719 = vmatprep.subr.mxu1 %v102_v13 }
  0xca   :  { %720 = vmatpush3.msra.mxu1 %v102_v13 }
  0xcb   :  { %722 = vmatmul.mubr.msk.f32.vlgmr.msra.gmra.mxu1 %vm29_vm0, %v847_v5 }
  0xcc   :  { %724 = vmatprep.mubr.msk.f32.mxu1 %vm29_vm0, %v853_v6 }
  0xcf   :  { %725 = vmatmul.mubr.msk.f32.gmra.mxu1 %vm29_vm0, %v859_v7 }
  0xd0   :  { %727 = vmatprep.mubr.msk.f32.mxu1 %vm29_vm0, %v865_v8 }
  0xd3   :  { %728 = vmatmul.mubr.msk.f32.gmra.mxu1 %vm29_vm0, %v871_v9 }
  0xd4   :  { %730 = vmatprep.mubr.msk.f32.mxu1 %vm29_vm0, %v877_v10 }
  0xd7   :  { %731 = vmatmul.mubr.msk.f32.gmra.mxu1 %vm29_vm0, %v883_v11 }
  0xd8   :  { %749 = vmatprep.mubr.msk.f32.mxu1 %vm280_vm1, %v264_v14 }
 0x18b   :  { %v723_v15 = vpop.f32.mrf.mxu1 }
 0x18c   :  { %v241_v29 = vsub.f32 %v847_v5, %v723_v15 }
 0x18d   :  { %v201_v16 = vpop.f32.mrf.mxu1 }
 0x18e   :  { %v240_v30 = vsub.f32 %v839_v4, %v201_v16 }
 0x18f   :  { %v726_v17 = vpop.f32.mrf.mxu1 }
 0x190   :  { %v243_v27 = vsub.f32 %v859_v7, %v726_v17 }
 0x191   :  { %v211_v18 = vpop.f32.mrf.mxu1 }
 0x192   :  { %v242_v28 = vsub.f32 %v853_v6, %v211_v18 }
 0x193   :  { %v729_v19 = vpop.f32.mrf.mxu1 }
 0x194   :  { %v245_v25 = vsub.f32 %v871_v9, %v729_v19 }
 0x195   :  { %v221_v20 = vpop.f32.mrf.mxu1 }
 0x196   :  { %v244_v26 = vsub.f32 %v865_v8, %v221_v20 }
 0x197   :  { %v732_v21 = vpop.f32.mrf.mxu1 }
 0x198   :  { %v247_v22 = vsub.f32 %v883_v11, %v732_v21 }
 0x199   :  { %v231_v23 = vpop.f32.mrf.mxu1 }
 0x19a   :  { %v246_v24 = vsub.f32 %v877_v10, %v231_v23  ;;  %733 = vmatprep.subr.mxu1 %v247_v22  ;;  %768 = vmatprep.subr.mxu0 %v247_v22 }
 0x19b   :  { %734 = vmatpush3.msra.mxu1 %v247_v22  ;;  %769 = vmatpush3.msra.mxu0 %v247_v22 }
 0x19c   :  { %735 = vmatprep.subr.mxu1 %v246_v24  ;;  %770 = vmatprep.subr.mxu0 %v246_v24 }
 0x19d   :  { %736 = vmatpush3.msra.mxu1 %v246_v24  ;;  %771 = vmatpush3.msra.mxu0 %v246_v24 }
 0x19e   :  { %737 = vmatprep.subr.mxu1 %v245_v25  ;;  %772 = vmatprep.subr.mxu0 %v245_v25 }
 0x19f   :  { %738 = vmatpush3.msra.mxu1 %v245_v25  ;;  %773 = vmatpush3.msra.mxu0 %v245_v25 }
 0x1a0   :  { %739 = vmatprep.subr.mxu1 %v244_v26  ;;  %774 = vmatprep.subr.mxu0 %v244_v26 }
 0x1a1   :  { %740 = vmatpush3.msra.mxu1 %v244_v26  ;;  %775 = vmatpush3.msra.mxu0 %v244_v26 }
 0x1a2   :  { %741 = vmatprep.subr.mxu1 %v243_v27  ;;  %776 = vmatprep.subr.mxu0 %v243_v27 }
 0x1a3   :  { %742 = vmatpush3.msra.mxu1 %v243_v27  ;;  %777 = vmatpush3.msra.mxu0 %v243_v27 }
 0x1a4   :  { %743 = vmatprep.subr.mxu1 %v242_v28  ;;  %778 = vmatprep.subr.mxu0 %v242_v28 }
 0x1a5   :  { %744 = vmatpush3.msra.mxu1 %v242_v28  ;;  %779 = vmatpush3.msra.mxu0 %v242_v28 }
 0x1a6   :  { %745 = vmatprep.subr.mxu1 %v241_v29  ;;  %780 = vmatprep.subr.mxu0 %v241_v29 }
 0x1a7   :  { %746 = vmatpush3.msra.mxu1 %v241_v29  ;;  %781 = vmatpush3.msra.mxu0 %v241_v29 }
 0x1a8   :  { %747 = vmatprep.subr.mxu1 %v240_v30  ;;  %782 = vmatprep.subr.mxu0 %v240_v30 }
 0x1a9   :  { %748 = vmatpush3.msra.mxu1 %v240_v30  ;;  %783 = vmatpush3.msra.mxu0 %v240_v30 }
 0x1aa   :  { %750 = vmatmul.mubr.msk.f32.vlgmr.msra.gmra.mxu1 %vm280_vm1, %v265_v31  ;;  %785 = vmatmul.mubr.msk.f32.vlgmr.msra.gmra.mxu0 %vm280_vm1, %v468_v33 }
 0x1ab   :  { %756 = vmatprep.mubr.msk.f32.mxu1 %vm29_vm0, %v839_v4  ;;  %787 = vmatprep.mubr.msk.f32.mxu0 %vm280_vm1, %v469_v34 }
 0x1ae   :  { %788 = vmatmul.mubr.msk.f32.gmra.mxu0 %vm280_vm1, %v470_v35 }
 0x1af   :  { %790 = vmatprep.mubr.msk.f32.mxu0 %vm280_vm1, %v471_v36 }
 0x1b2   :  { %791 = vmatmul.mubr.msk.f32.gmra.mxu0 %vm280_vm1, %v472_v37 }
 0x1b3   :  { %793 = vmatprep.mubr.msk.f32.mxu0 %vm280_vm1, %v473_v38 }
 0x1b6   :  { %794 = vmatmul.mubr.msk.f32.gmra.mxu0 %vm280_vm1, %v474_v39 }
 0x26a   :  { %v751_v40 = vpop.f32.mrf.mxu1  ;;  %v786_v42 = vpop.f32.mrf.mxu0 }
 0x26b   :  { %752 = vmatprep.subr.mxu1 %v751_v40  ;;  %v605_v46 = vmul.f32 0.25, %v786_v42 }
 0x26c   :  { %v353_v41 = vpop.f32.mrf.mxu1  ;;  %753 = vmatpush3.msra.mxu1 %v751_v40  ;;  %v565_v43 = vpop.f32.mrf.mxu0 }
 0x26d   :  { %754 = vmatprep.subr.mxu1 %v353_v41  ;;  %v604_v49 = vmul.f32 0.25, %v565_v43 }
 0x26e   :  { %755 = vmatpush3.msra.mxu1 %v353_v41  ;;  %v789_v44 = vpop.f32.mrf.mxu0 }
 0x26f   :  { %757 = vmatmul.mubr.msk.f32.vlgmr.msra.gmra.mxu1 %vm29_vm0, %v847_v5  ;;  %v607_v51 = vmul.f32 0.25, %v789_v44 }
 0x270   :  { %759 = vmatprep.mubr.msk.f32.mxu1 %vm29_vm0, %v853_v6  ;;  %v575_v45 = vpop.f32.mrf.mxu0 }
 0x271   :  { %v606_v56 = vmul.f32 0.25, %v575_v45 }
 0x272   :  { %v792_v47 = vpop.f32.mrf.mxu0 }
 0x273   :  { %760 = vmatmul.mubr.msk.f32.gmra.mxu1 %vm29_vm0, %v859_v7  ;;  %v609_v58 = vmul.f32 0.25, %v792_v47 }
 0x274   :  { %762 = vmatprep.mubr.msk.f32.mxu1 %vm29_vm0, %v865_v8  ;;  %v585_v53 = vpop.f32.mrf.mxu0 }
 0x275   :  { %v608_v63 = vmul.f32 0.25, %v585_v53 }
 0x276   :  { %v795_v60 = vpop.f32.mrf.mxu0 }
 0x277   :  { %763 = vmatmul.mubr.msk.f32.gmra.mxu1 %vm29_vm0, %v871_v9  ;;  %v611_v1 = vmul.f32 0.25, %v795_v60 }
 0x278   :  { %765 = vmatprep.mubr.msk.f32.mxu1 %vm29_vm0, %v877_v10  ;;  %v595_v3 = vpop.f32.mrf.mxu0 }
 0x279   :  { %v610_v6 = vmul.f32 0.25, %v595_v3 }
 0x27b   :  { %766 = vmatmul.mubr.msk.f32.gmra.mxu1 %vm29_vm0, %v883_v11 }
 0x32f   :  { %v758_v48 = vpop.f32.mrf.mxu1 }
 0x330   :  { %v613_v50 = vsub.f32 %v758_v48, %v605_v46 }
 0x331   :  { %v428_v52 = vpop.f32.mrf.mxu1 }
 0x332   :  { %621 = vst.msk [vmem:[%s994_s4 + $0x8] sm:$0xff] %vm29_vm0, %v613_v50  ;;  %v612_v54 = vsub.f32 %v428_v52, %v604_v49 }
 0x333   :  { %v761_v55 = vpop.f32.mrf.mxu1 }
 0x334   :  { %620 = vst.msk [vmem:[%s994_s4] sm:$0xff] %vm29_vm0, %v612_v54  ;;  %v615_v57 = vsub.f32 %v761_v55, %v607_v51 }
 0x335   :  { %v438_v59 = vpop.f32.mrf.mxu1 }
 0x336   :  { %623 = vst.msk [vmem:[%s994_s4 + $0x18] sm:$0xff] %vm29_vm0, %v615_v57  ;;  %v614_v61 = vsub.f32 %v438_v59, %v606_v56 }
 0x337   :  { %v764_v62 = vpop.f32.mrf.mxu1 }
 0x338   :  { %622 = vst.msk [vmem:[%s994_s4 + $0x10] sm:$0xff] %vm29_vm0, %v614_v61  ;;  %v617_v0 = vsub.f32 %v764_v62, %v609_v58 }
 0x339   :  { %v448_v2 = vpop.f32.mrf.mxu1 }
 0x33a   :  { %625 = vst.msk [vmem:[%s994_s4 + $0x28] sm:$0xff] %vm29_vm0, %v617_v0  ;;  %v616_v4 = vsub.f32 %v448_v2, %v608_v63 }
 0x33b   :  { %v767_v5 = vpop.f32.mrf.mxu1 }
 0x33c   :  { %624 = vst.msk [vmem:[%s994_s4 + $0x20] sm:$0xff] %vm29_vm0, %v616_v4  ;;  %v619_v7 = vsub.f32 %v767_v5, %v611_v1 }
 0x33d   :  { %v458_v8 = vpop.f32.mrf.mxu1 }
 0x33e   :  { %627 = vst.msk [vmem:[%s994_s4 + $0x38] sm:$0xff] %vm29_vm0, %v619_v7  ;;  %v618_v9 = vsub.f32 %v458_v8, %v610_v6 }
 0x340   :  { %626 = vst.msk [vmem:[%s994_s4 + $0x30] sm:$0xff] %vm29_vm0, %v618_v9 }

</bundles_post_ra>
